<compile_context>
chip_gen: v7x
topology: tpu7x:2x2x1
jax: 0.10.0
libtpu: 0.0.40
codegen_flags: <defaults>
</compile_context>

<pallas_src>
import functools
import math

import jax
import jax.numpy as jnp
from jax.experimental import pallas as pl
from jax.experimental.pallas import tpu as pltpu

_VMEM_LIMIT = 64 * 1024 * 1024


# ---------------------------------------------------------------------------
# Tile selection with padding fallback.
# ---------------------------------------------------------------------------
def _round_up(x, m):
    return ((x + m - 1) // m) * m


def _pick_tile_pad(dim, pref, quantum):
    """Return (tile, padded_dim).

    If dim <= pref the whole dim is one block (legal: block == full dim).
    Otherwise prefer an exact divisor of dim that is a multiple of `quantum`
    and <= pref (no padding).  If none exists, pad dim up to a multiple of the
    preferred tile (e.g. GPT-2 vocab 50257 -> tile 512, padded 50688).
    """
    if dim <= pref:
        return dim, dim
    cap = (pref // quantum) * quantum
    t = cap
    while t >= quantum:
        if dim % t == 0:
            return t, dim
        t -= quantum
    return cap, _round_up(dim, cap)


def _gelu_f32(x):
    # 0.5 * x * (1 + tanh(sqrt(2/pi) * (x + 0.044715 * x^3))), f32.
    c = jnp.float32(0.7978845608028654)  # sqrt(2/pi)
    return 0.5 * x * (1.0 + jnp.tanh(c * (x + 0.044715 * x * x * x)))


# ---------------------------------------------------------------------------
# Fused Linear kernel:  out = act(x @ w [+ b]) [+ residual]
# MXU operands optionally cast to bf16; accumulation and epilogue in f32.
# ---------------------------------------------------------------------------
def _linear_kernel(*refs, activation, has_bias, has_residual, matmul_dtype):
    it = iter(refs)
    x_ref = next(it)
    w_ref = next(it)
    b_ref = next(it) if has_bias else None
    r_ref = next(it) if has_residual else None
    o_ref = next(it)
    acc_ref = next(it)

    @pl.when(pl.program_id(2) == 0)
    def _():
        acc_ref[...] = jnp.zeros_like(acc_ref)

    acc_ref[...] += jnp.dot(x_ref[...].astype(matmul_dtype),
                            w_ref[...].astype(matmul_dtype),
                            preferred_element_type=jnp.float32)

    @pl.when(pl.program_id(2) == pl.num_programs(2) - 1)
    def _():
        acc = acc_ref[...]
        if has_bias:
            acc = acc + b_ref[...].astype(jnp.float32)
        if activation == "gelu":
            acc = _gelu_f32(acc)
        if has_residual:
            acc = acc + r_ref[...].astype(jnp.float32)
        o_ref[...] = acc.astype(o_ref.dtype)


def linear(x, w, b=None, residual=None, activation=None,
           matmul_dtype=jnp.float32):
    """y = activation(x @ w + b) + residual.  x: (..., K), w: (K, N)."""
    lead = x.shape[:-1]
    K = x.shape[-1]
    M = int(math.prod(lead)) if lead else 1
    N = w.shape[1]

    tm, Mp = _pick_tile_pad(M, 256, 8)
    tn, Np = _pick_tile_pad(N, 512, 128)
    tk, Kp = _pick_tile_pad(K, 512, 128)

    x2 = x.reshape(M, K)
    if (Mp, Kp) != (M, K):
        x2 = jnp.pad(x2, ((0, Mp - M), (0, Kp - K)))
    w2 = w if (Kp, Np) == (K, N) else jnp.pad(w, ((0, Kp - K), (0, Np - N)))

    has_bias = b is not None
    has_residual = residual is not None

    inputs = [x2, w2]
    in_specs = [
        pl.BlockSpec((tm, tk), lambda i, j, k: (i, k)),
        pl.BlockSpec((tk, tn), lambda i, j, k: (k, j)),
    ]
    if has_bias:
        b2 = b.reshape(1, N).astype(x.dtype)
        if Np != N:
            b2 = jnp.pad(b2, ((0, 0), (0, Np - N)))
        inputs.append(b2)
        in_specs.append(pl.BlockSpec((1, tn), lambda i, j, k: (0, j)))
    if has_residual:
        r2 = residual.reshape(M, N)
        if (Mp, Np) != (M, N):
            r2 = jnp.pad(r2, ((0, Mp - M), (0, Np - N)))
        inputs.append(r2)
        # Index ignores k -> block stays VMEM-resident across the reduction.
        in_specs.append(pl.BlockSpec((tm, tn), lambda i, j, k: (i, j)))

    grid = (Mp // tm, Np // tn, Kp // tk)
    out = pl.pallas_call(
        functools.partial(_linear_kernel, activation=activation,
                          has_bias=has_bias, has_residual=has_residual,
                          matmul_dtype=matmul_dtype),
        out_shape=jax.ShapeDtypeStruct((Mp, Np), x.dtype),
        grid_spec=pltpu.PrefetchScalarGridSpec(
            num_scalar_prefetch=0,
            grid=grid,
            in_specs=in_specs,
            out_specs=pl.BlockSpec((tm, tn), lambda i, j, k: (i, j)),
            scratch_shapes=[pltpu.VMEM((tm, tn), jnp.float32)],
        ),
        compiler_params=pltpu.CompilerParams(
            dimension_semantics=("parallel", "parallel", "arbitrary"),
            vmem_limit_bytes=_VMEM_LIMIT),
    )(*inputs)
    if (Mp, Np) != (M, N):
        out = out[:M, :N]
    return out.reshape(*lead, N)


# ---------------------------------------------------------------------------
# LayerNorm kernel (population variance, eps inside rsqrt), f32 internals.
# ---------------------------------------------------------------------------
def _layernorm_kernel(x_ref, g_ref, b_ref, o_ref, *, eps):
    x = x_ref[...].astype(jnp.float32)
    mean = jnp.mean(x, axis=-1, keepdims=True)
    cent = x - mean
    var = jnp.mean(cent * cent, axis=-1, keepdims=True)
    inv = jax.lax.rsqrt(var + eps)
    g = g_ref[...].astype(jnp.float32)
    b = b_ref[...].astype(jnp.float32)
    o_ref[...] = (cent * inv * g + b).astype(o_ref.dtype)


def layer_norm(x, scale, shift, eps=1e-5):
    lead = x.shape[:-1]
    H = x.shape[-1]
    M = int(math.prod(lead)) if lead else 1
    rt, Mp = _pick_tile_pad(M, 256, 8)
    x2 = x.reshape(M, H)
    if Mp != M:
        x2 = jnp.pad(x2, ((0, Mp - M), (0, 0)))
    g2 = scale.reshape(1, H).astype(x.dtype)
    b2 = shift.reshape(1, H).astype(x.dtype)

    out = pl.pallas_call(
        functools.partial(_layernorm_kernel, eps=eps),
        out_shape=jax.ShapeDtypeStruct((Mp, H), x.dtype),
        grid_spec=pltpu.PrefetchScalarGridSpec(
            num_scalar_prefetch=0,
            grid=(Mp // rt,),
            in_specs=[
                pl.BlockSpec((rt, H), lambda i: (i, 0)),
                pl.BlockSpec((1, H), lambda i: (0, 0)),
                pl.BlockSpec((1, H), lambda i: (0, 0)),
            ],
            out_specs=pl.BlockSpec((rt, H), lambda i: (i, 0)),
        ),
        compiler_params=pltpu.CompilerParams(
            dimension_semantics=("parallel",),
            vmem_limit_bytes=_VMEM_LIMIT),
    )(x2, g2, b2)
    if Mp != M:
        out = out[:M]
    return out.reshape(*lead, H)


# ---------------------------------------------------------------------------
# Flash-style causal attention: grid (B*nh, S/blk, S/blk), online softmax.
# ---------------------------------------------------------------------------
def _flash_attn_kernel(q_ref, k_ref, v_ref, o_ref, m_sc, l_sc, acc_sc, *,
                       scale, block, matmul_dtype):
    qi = pl.program_id(1)
    ki = pl.program_id(2)

    @pl.when(ki == 0)
    def _():
        m_sc[...] = jnp.full_like(m_sc, -1e30)
        l_sc[...] = jnp.zeros_like(l_sc)
        acc_sc[...] = jnp.zeros_like(acc_sc)

    # Causal block skip: blocks strictly above the diagonal are fully masked.
    @pl.when(ki <= qi)
    def _():
        # Fold the 1/sqrt(dh) scale into q (O(S*dh) instead of O(S^2)).
        q = (q_ref[0].astype(jnp.float32) * scale).astype(matmul_dtype)
        k = k_ref[0].astype(matmul_dtype)
        s = jax.lax.dot_general(q, k, (((1,), (1,)), ((), ())),
                                preferred_element_type=jnp.float32)
        row = qi * block + jax.lax.broadcasted_iota(jnp.int32, s.shape, 0)
        col = ki * block + jax.lax.broadcasted_iota(jnp.int32, s.shape, 1)
        s = jnp.where(col <= row, s, jnp.float32(-1e30))

        m_prev = m_sc[...]
        m_new = jnp.maximum(m_prev, jnp.max(s, axis=-1, keepdims=True))
        alpha = jnp.exp(m_prev - m_new)
        p = jnp.exp(s - m_new)
        l_sc[...] = alpha * l_sc[...] + jnp.sum(p, axis=-1, keepdims=True)
        acc_sc[...] = alpha * acc_sc[...] + jnp.dot(
            p.astype(matmul_dtype), v_ref[0].astype(matmul_dtype),
            preferred_element_type=jnp.float32)
        m_sc[...] = m_new

    @pl.when(ki == pl.num_programs(2) - 1)
    def _():
        inv = pl.reciprocal(l_sc[...], approx=False)
        o_ref[0] = (acc_sc[...] * inv).astype(o_ref.dtype)


def causal_flash_attention(q, k, v, matmul_dtype=jnp.float32):
    """q, k, v: (BH, S, Dh) -> softmax(q k^T / sqrt(Dh) + causal mask) v."""
    BH, S, Dh = q.shape
    scale = 1.0 / math.sqrt(Dh)
    blk, Sp = _pick_tile_pad(S, 128, 8)
    if Sp != S:
        pad = ((0, 0), (0, Sp - S), (0, 0))
        q, k, v = jnp.pad(q, pad), jnp.pad(k, pad), jnp.pad(v, pad)
    nblk = Sp // blk

    q_spec = pl.BlockSpec((1, blk, Dh), lambda b, i, j: (b, i, 0))
    kv_spec = pl.BlockSpec((1, blk, Dh), lambda b, i, j: (b, j, 0))
    out = pl.pallas_call(
        functools.partial(_flash_attn_kernel, scale=scale, block=blk,
                          matmul_dtype=matmul_dtype),
        out_shape=jax.ShapeDtypeStruct((BH, Sp, Dh), q.dtype),
        grid_spec=pltpu.PrefetchScalarGridSpec(
            num_scalar_prefetch=0,
            grid=(BH, nblk, nblk),
            in_specs=[q_spec, kv_spec, kv_spec],
            out_specs=pl.BlockSpec((1, blk, Dh), lambda b, i, j: (b, i, 0)),
            scratch_shapes=[pltpu.VMEM((blk, 1), jnp.float32),
                            pltpu.VMEM((blk, 1), jnp.float32),
                            pltpu.VMEM((blk, Dh), jnp.float32)],
        ),
        compiler_params=pltpu.CompilerParams(
            dimension_semantics=("parallel", "parallel", "arbitrary"),
            vmem_limit_bytes=_VMEM_LIMIT),
    )(q, k, v)
    if Sp != S:
        out = out[:, :S, :]
    return out


# ---------------------------------------------------------------------------
# GPT model (forward only, eval mode: dropout == identity)
# ---------------------------------------------------------------------------
def transformer_block(x, p, cfg, matmul_dtype):
    B, S, H = x.shape
    nh = cfg["n_heads"]
    dh = H // nh

    # --- attention sub-block (fused QKV, residual fused into wo epilogue) ---
    shortcut = x
    y = layer_norm(x, p["ln1_scale"], p["ln1_shift"])
    qkv = linear(y, p["w_qkv"], p.get("b_qkv"), matmul_dtype=matmul_dtype)

    def to_heads(t):
        return t.reshape(B, S, nh, dh).transpose(0, 2, 1, 3).reshape(B * nh, S, dh)

    qh = to_heads(qkv[..., 0 * H:1 * H])
    kh = to_heads(qkv[..., 1 * H:2 * H])
    vh = to_heads(qkv[..., 2 * H:3 * H])
    oh = causal_flash_attention(qh, kh, vh, matmul_dtype=matmul_dtype)
    o = oh.reshape(B, nh, S, dh).transpose(0, 2, 1, 3).reshape(B, S, H)
    x = linear(o, p["wo"], p["bo"], residual=shortcut,
               matmul_dtype=matmul_dtype)

    # --- feed-forward sub-block (GELU fused into w1, residual into w2) ---
    shortcut = x
    y = layer_norm(x, p["ln2_scale"], p["ln2_shift"])
    h = linear(y, p["w1"], p["b1"], activation="gelu",
               matmul_dtype=matmul_dtype)
    x = linear(h, p["w2"], p["b2"], residual=shortcut,
               matmul_dtype=matmul_dtype)
    return x


def gpt_forward(params, in_idx, cfg, matmul_dtype=jnp.float32):
    B, S = in_idx.shape
    tok = jnp.take(params["tok_emb"], in_idx, axis=0)        # (B, S, H)
    pos = params["pos_emb"][:S]                               # (S, H)
    x = tok + pos                                             # dropout: identity
    for blk in params["blocks"]:
        x = transformer_block(x, blk, cfg, matmul_dtype)
    x = layer_norm(x, params["final_norm_scale"], params["final_norm_shift"])
    logits = linear(x, params["out_w"], None, matmul_dtype=matmul_dtype)
    return logits


# ---------------------------------------------------------------------------
# Parameter init (deterministic) and pure-JAX reference for validation.
# ---------------------------------------------------------------------------
def init_params(key, cfg):
    H = cfg["emb_dim"]
    V = cfg["vocab_size"]
    L = cfg["context_length"]
    nl = cfg["n_layers"]
    keys = jax.random.split(key, 4 + nl)

    def normal(k, shape, s=0.02):
        return (s * jax.random.normal(k, shape)).astype(jnp.float32)

    params = {
        "tok_emb": normal(keys[0], (V, H)),
        "pos_emb": normal(keys[1], (L, H)),
        "final_norm_scale": jnp.ones((H,), jnp.float32),
        "final_norm_shift": jnp.zeros((H,), jnp.float32),
        "out_w": normal(keys[2], (H, V)),
        "blocks": [],
    }
    for li in range(nl):
        bk = jax.random.split(keys[4 + li], 7)
        blk = {
            "ln1_scale": jnp.ones((H,), jnp.float32),
            "ln1_shift": jnp.zeros((H,), jnp.float32),
            "ln2_scale": jnp.ones((H,), jnp.float32),
            "ln2_shift": jnp.zeros((H,), jnp.float32),
            "w_qkv": normal(bk[0], (H, 3 * H)),   # fused [wq | wk | wv]
            "wo": normal(bk[1], (H, H)),
            "bo": normal(bk[2], (H,)),
            "w1": normal(bk[3], (H, 4 * H)),
            "b1": normal(bk[4], (4 * H,)),
            "w2": normal(bk[5], (4 * H, H)),
            "b2": normal(bk[6], (H,)),
        }
        if cfg["qkv_bias"]:
            blk["b_qkv"] = jnp.zeros((3 * H,), jnp.float32)
        params["blocks"].append(blk)
    return params


def ref_forward(params, in_idx, cfg):
    H = cfg["emb_dim"]
    nh = cfg["n_heads"]
    dh = H // nh
    B, S = in_idx.shape

    def ln(x, g, b):
        m = x.mean(-1, keepdims=True)
        v = ((x - m) ** 2).mean(-1, keepdims=True)
        return g * (x - m) / jnp.sqrt(v + 1e-5) + b

    def gelu(x):
        return 0.5 * x * (1.0 + jnp.tanh(
            jnp.sqrt(jnp.float32(2.0 / jnp.pi)) * (x + 0.044715 * x ** 3)))

    x = params["tok_emb"][in_idx] + params["pos_emb"][:S]
    for p in params["blocks"]:
        sc = x
        y = ln(x, p["ln1_scale"], p["ln1_shift"])
        qkv = y @ p["w_qkv"]
        if "b_qkv" in p:
            qkv = qkv + p["b_qkv"]
        q, k, v = jnp.split(qkv, 3, axis=-1)

        def heads(t):
            return t.reshape(B, S, nh, dh).transpose(0, 2, 1, 3)

        qh, kh, vh = heads(q), heads(k), heads(v)
        s = jnp.einsum("bhqd,bhkd->bhqk", qh, kh) / math.sqrt(dh)
        mask = jnp.tril(jnp.ones((S, S), dtype=bool))
        s = jnp.where(mask, s, -jnp.inf)
        w = jax.nn.softmax(s, axis=-1)
        o = jnp.einsum("bhqk,bhkd->bhqd", w, vh)
        o = o.transpose(0, 2, 1, 3).reshape(B, S, H)
        x = (o @ p["wo"] + p["bo"]) + sc

        sc = x
        y = ln(x, p["ln2_scale"], p["ln2_shift"])
        h = gelu(y @ p["w1"] + p["b1"])
        x = (h @ p["w2"] + p["b2"]) + sc

    x = ln(x, params["final_norm_scale"], params["final_norm_shift"])
    return x @ params["out_w"]


if __name__ == "__main__":
    # Small config consistent with GPTModel (emb_dim=32, 4 heads, 2 layers).
    cfg = {
        "vocab_size": 128,
        "context_length": 16,
        "emb_dim": 32,
        "n_heads": 4,
        "n_layers": 2,
        "drop_rate": 0.0,
        "qkv_bias": False,
    }
    key = jax.random.PRNGKey(0)
    pkey, dkey = jax.random.split(key)
    params = init_params(pkey, cfg)
    in_idx = jax.random.randint(dkey, (2, 8), 0, cfg["vocab_size"])  # batch=2, seq=8

    ref = ref_forward(params, in_idx, cfg)

    # f32 MXU operands: tight check against the pure-JAX reference.
    fwd_f32 = jax.jit(functools.partial(gpt_forward, cfg=cfg,
                                        matmul_dtype=jnp.float32))
    logits = fwd_f32(params, in_idx)
    jax.block_until_ready(logits)
    assert logits.shape == (2, 8, cfg["vocab_size"])
    assert logits.dtype == jnp.float32
    err_f32 = float(jnp.max(jnp.abs(logits - ref)))
    assert err_f32 < 1e-3, f"f32 path max abs err {err_f32}"

    # bf16 MXU operands (the production setting per the perf review):
    # f32 accumulation / epilogues, so only low-order bits move.
    fwd_bf16 = jax.jit(functools.partial(gpt_forward, cfg=cfg,
                                         matmul_dtype=jnp.bfloat16))
    logits_bf16 = fwd_bf16(params, in_idx)
    jax.block_until_ready(logits_bf16)
    err_bf16 = float(jnp.max(jnp.abs(logits_bf16 - ref)))
    assert err_bf16 < 3e-2, f"bf16 path max abs err {err_bf16}"

    print("KERNEL_OK")
</pallas_src>

<mosaic_0001>
module attributes {stable_mosaic.version = 11 : i64} {
  func.func @_linear_kernel(%arg0: i32, %arg1: i32, %arg2: i32, %arg3: memref<16x32xf32, #tpu.memory_space<vmem>>, %arg4: memref<32x96xf32, #tpu.memory_space<vmem>>, %arg5: memref<16x96xf32, #tpu.memory_space<vmem>>, %arg6: memref<16x96xf32, #tpu.memory_space<vmem>>) attributes {dimension_semantics = [#tpu.dimension_semantics<parallel>, #tpu.dimension_semantics<parallel>, #tpu.dimension_semantics<arbitrary>], iteration_bounds = array<i64: 1, 1, 1>, scalar_prefetch = 0 : i64, scratch_operands = 1 : i64, tpu.core_type = #tpu.core_type<tc>, window_params = [{transform_indices = @transform_0, window_bounds = array<i64: 16, 32>}, {transform_indices = @transform_1, window_bounds = array<i64: 32, 96>}, {transform_indices = @transform_2, window_bounds = array<i64: 16, 96>}]} {
    %c0_i32 = arith.constant 0 : i32
    %0 = arith.cmpi eq, %arg2, %c0_i32 : i32
    %1 = arith.extui %0 : i1 to i32
    %c0_i32_0 = arith.constant 0 : i32
    %2 = arith.cmpi ne, %1, %c0_i32_0 : i32
    scf.if %2 {
      %cst_10 = arith.constant 0.000000e+00 : f32
      %12 = vector.broadcast %cst_10 : f32 to vector<16x96xf32>
      %c0_11 = arith.constant 0 : index
      %c0_12 = arith.constant 0 : index
      %13 = vector.load %arg6[%c0_11, %c0_12] : memref<16x96xf32, #tpu.memory_space<vmem>>, vector<16x96xf32>
      tpu.vector_store %arg6[%c0_11, %c0_12], %12 {strides = array<i32>} : memref<16x96xf32, #tpu.memory_space<vmem>>, vector<16x96xf32>,
    } else {
    }
    %c0 = arith.constant 0 : index
    %c0_1 = arith.constant 0 : index
    %3 = vector.load %arg6[%c0, %c0_1] : memref<16x96xf32, #tpu.memory_space<vmem>>, vector<16x96xf32>
    %c0_2 = arith.constant 0 : index
    %c0_3 = arith.constant 0 : index
    %4 = vector.load %arg3[%c0_2, %c0_3] : memref<16x32xf32, #tpu.memory_space<vmem>>, vector<16x32xf32>
    %c0_4 = arith.constant 0 : index
    %c0_5 = arith.constant 0 : index
    %5 = vector.load %arg4[%c0_4, %c0_5] : memref<32x96xf32, #tpu.memory_space<vmem>>, vector<32x96xf32>
    %cst = arith.constant dense<0.000000e+00> : vector<16x96xf32>
    %6 = tpu.matmul %4, %5, %cst {dimension_numbers = #tpu.dot_dimension_numbers<[1], [0], [0], [1], [0, 0, 1, 1], [], []>} : vector<16x32xf32>, vector<32x96xf32>, vector<16x96xf32> -> vector<16x96xf32>
    %7 = arith.addf %3, %6 : vector<16x96xf32>
    %c0_6 = arith.constant 0 : index
    %c0_7 = arith.constant 0 : index
    %8 = vector.load %arg6[%c0_6, %c0_7] : memref<16x96xf32, #tpu.memory_space<vmem>>, vector<16x96xf32>
    tpu.vector_store %arg6[%c0_6, %c0_7], %7 {strides = array<i32>} : memref<16x96xf32, #tpu.memory_space<vmem>>, vector<16x96xf32>,
    %c0_i32_8 = arith.constant 0 : i32
    %9 = arith.cmpi eq, %arg2, %c0_i32_8 : i32
    %10 = arith.extui %9 : i1 to i32
    %c0_i32_9 = arith.constant 0 : i32
    %11 = arith.cmpi ne, %10, %c0_i32_9 : i32
    scf.if %11 {
      %c0_10 = arith.constant 0 : index
      %c0_11 = arith.constant 0 : index
      %12 = vector.load %arg6[%c0_10, %c0_11] : memref<16x96xf32, #tpu.memory_space<vmem>>, vector<16x96xf32>
      %c0_12 = arith.constant 0 : index
      %c0_13 = arith.constant 0 : index
      %13 = vector.load %arg5[%c0_12, %c0_13] : memref<16x96xf32, #tpu.memory_space<vmem>>, vector<16x96xf32>
      tpu.vector_store %arg5[%c0_12, %c0_13], %12 {strides = array<i32>} : memref<16x96xf32, #tpu.memory_space<vmem>>, vector<16x96xf32>,
    } else {
    }
    return
  }
  func.func @transform_0(%arg0: i32, %arg1: i32, %arg2: i32) -> (i32, i32) {
    %c0_i32 = arith.constant 0 : i32
    return %arg0, %arg2 : i32, i32
  }
  func.func @transform_1(%arg0: i32, %arg1: i32, %arg2: i32) -> (i32, i32) {
    %c0_i32 = arith.constant 0 : i32
    return %arg2, %arg1 : i32, i32
  }
  func.func @transform_2(%arg0: i32, %arg1: i32, %arg2: i32) -> (i32, i32) {
    %c0_i32 = arith.constant 0 : i32
    return %arg0, %arg1 : i32, i32
  }
}

module attributes {stable_mosaic.version = 11 : i64} {
  func.func @_layernorm_kernel(%arg0: i32, %arg1: memref<16x32xf32, #tpu.memory_space<vmem>>, %arg2: memref<1x32xf32, #tpu.memory_space<vmem>>, %arg3: memref<1x32xf32, #tpu.memory_space<vmem>>, %arg4: memref<16x32xf32, #tpu.memory_space<vmem>>) attributes {dimension_semantics = [#tpu.dimension_semantics<parallel>], iteration_bounds = array<i64: 1>, scalar_prefetch = 0 : i64, scratch_operands = 0 : i64, tpu.core_type = #tpu.core_type<tc>, window_params = [{transform_indices = @transform_0, window_bounds = array<i64: 16, 32>}, {pipeline_mode = #tpu.pipeline_mode<synchronous>, transform_indices = @transform_1, window_bounds = array<i64: 1, 32>}, {pipeline_mode = #tpu.pipeline_mode<synchronous>, transform_indices = @transform_2, window_bounds = array<i64: 1, 32>}, {transform_indices = @transform_3, window_bounds = array<i64: 16, 32>}]} {
    %c0 = arith.constant 0 : index
    %c0_0 = arith.constant 0 : index
    %0 = vector.load %arg1[%c0, %c0_0] : memref<16x32xf32, #tpu.memory_space<vmem>>, vector<16x32xf32>
    %cst = arith.constant dense<0.000000e+00> : vector<16xf32>
    %1 = vector.multi_reduction <add>, %0, %cst [1] : vector<16x32xf32> to vector<16xf32>
    %2 = vector.shape_cast %1 : vector<16xf32> to vector<16x1xf32>
    %cst_1 = arith.constant 3.200000e+01 : f32
    %3 = vector.broadcast %cst_1 : f32 to vector<16x1xf32>
    %4 = arith.divf %2, %3 : vector<16x1xf32>
    %5 = vector.broadcast %4 : vector<16x1xf32> to vector<16x32xf32>
    %6 = arith.subf %0, %5 : vector<16x32xf32>
    %7 = arith.mulf %6, %6 : vector<16x32xf32>
    %cst_2 = arith.constant dense<0.000000e+00> : vector<16xf32>
    %8 = vector.multi_reduction <add>, %7, %cst_2 [1] : vector<16x32xf32> to vector<16xf32>
    %9 = vector.shape_cast %8 : vector<16xf32> to vector<16x1xf32>
    %cst_3 = arith.constant 3.200000e+01 : f32
    %10 = vector.broadcast %cst_3 : f32 to vector<16x1xf32>
    %11 = arith.divf %9, %10 : vector<16x1xf32>
    %cst_4 = arith.constant 9.99999974E-6 : f32
    %12 = vector.broadcast %cst_4 : f32 to vector<16x1xf32>
    %13 = arith.addf %11, %12 : vector<16x1xf32>
    %14 = math.rsqrt %13 : vector<16x1xf32>
    %c0_5 = arith.constant 0 : index
    %c0_6 = arith.constant 0 : index
    %15 = vector.load %arg2[%c0_5, %c0_6] : memref<1x32xf32, #tpu.memory_space<vmem>>, vector<1x32xf32>
    %c0_7 = arith.constant 0 : index
    %c0_8 = arith.constant 0 : index
    %16 = vector.load %arg3[%c0_7, %c0_8] : memref<1x32xf32, #tpu.memory_space<vmem>>, vector<1x32xf32>
    %17 = vector.broadcast %14 : vector<16x1xf32> to vector<16x32xf32>
    %18 = arith.mulf %6, %17 : vector<16x32xf32>
    %19 = vector.broadcast %15 : vector<1x32xf32> to vector<16x32xf32>
    %20 = arith.mulf %18, %19 : vector<16x32xf32>
    %21 = vector.broadcast %16 : vector<1x32xf32> to vector<16x32xf32>
    %22 = arith.addf %20, %21 : vector<16x32xf32>
    %c0_9 = arith.constant 0 : index
    %c0_10 = arith.constant 0 : index
    %23 = vector.load %arg4[%c0_9, %c0_10] : memref<16x32xf32, #tpu.memory_space<vmem>>, vector<16x32xf32>
    tpu.vector_store %arg4[%c0_9, %c0_10], %22 {strides = array<i32>} : memref<16x32xf32, #tpu.memory_space<vmem>>, vector<16x32xf32>,
    return
  }
  func.func @transform_0(%arg0: i32) -> (i32, i32) {
    %c0_i32 = arith.constant 0 : i32
    %c0_i32_0 = arith.constant 0 : i32
    return %arg0, %c0_i32 : i32, i32
  }
  func.func @transform_1(%arg0: i32) -> (i32, i32) {
    %c0_i32 = arith.constant 0 : i32
    %c0_i32_0 = arith.constant 0 : i32
    %c0_i32_1 = arith.constant 0 : i32
    return %c0_i32, %c0_i32_0 : i32, i32
  }
  func.func @transform_2(%arg0: i32) -> (i32, i32) {
    %c0_i32 = arith.constant 0 : i32
    %c0_i32_0 = arith.constant 0 : i32
    %c0_i32_1 = arith.constant 0 : i32
    return %c0_i32, %c0_i32_0 : i32, i32
  }
  func.func @transform_3(%arg0: i32) -> (i32, i32) {
    %c0_i32 = arith.constant 0 : i32
    %c0_i32_0 = arith.constant 0 : i32
    return %arg0, %c0_i32 : i32, i32
  }
}

module attributes {stable_mosaic.version = 11 : i64} {
  func.func @_flash_attn_kernel(%arg0: i32, %arg1: i32, %arg2: i32, %arg3: memref<1x8x8xf32, #tpu.memory_space<vmem>>, %arg4: memref<1x8x8xf32, #tpu.memory_space<vmem>>, %arg5: memref<1x8x8xf32, #tpu.memory_space<vmem>>, %arg6: memref<1x8x8xf32, #tpu.memory_space<vmem>>, %arg7: memref<8x1xf32, #tpu.memory_space<vmem>>, %arg8: memref<8x1xf32, #tpu.memory_space<vmem>>, %arg9: memref<8x8xf32, #tpu.memory_space<vmem>>) attributes {dimension_semantics = [#tpu.dimension_semantics<parallel>, #tpu.dimension_semantics<parallel>, #tpu.dimension_semantics<arbitrary>], iteration_bounds = array<i64: 8, 1, 1>, scalar_prefetch = 0 : i64, scratch_operands = 3 : i64, tpu.core_type = #tpu.core_type<tc>, window_params = [{transform_indices = @transform_0, window_bounds = array<i64: 1, 8, 8>}, {transform_indices = @transform_1, window_bounds = array<i64: 1, 8, 8>}, {transform_indices = @transform_2, window_bounds = array<i64: 1, 8, 8>}, {transform_indices = @transform_3, window_bounds = array<i64: 1, 8, 8>}]} {
    %c0_i32 = arith.constant 0 : i32
    %0 = arith.cmpi eq, %arg2, %c0_i32 : i32
    %1 = arith.extui %0 : i1 to i32
    %c0_i32_0 = arith.constant 0 : i32
    %2 = arith.cmpi ne, %1, %c0_i32_0 : i32
    scf.if %2 {
      %cst = arith.constant -1.000000e+30 : f32
      %9 = vector.broadcast %cst : f32 to vector<8x1xf32>
      %c0 = arith.constant 0 : index
      %c0_4 = arith.constant 0 : index
      %10 = vector.load %arg7[%c0, %c0_4] : memref<8x1xf32, #tpu.memory_space<vmem>>, vector<8x1xf32>
      tpu.vector_store %arg7[%c0, %c0_4], %9 {strides = array<i32>} : memref<8x1xf32, #tpu.memory_space<vmem>>, vector<8x1xf32>,
      %cst_5 = arith.constant 0.000000e+00 : f32
      %11 = vector.broadcast %cst_5 : f32 to vector<8x1xf32>
      %c0_6 = arith.constant 0 : index
      %c0_7 = arith.constant 0 : index
      %12 = vector.load %arg8[%c0_6, %c0_7] : memref<8x1xf32, #tpu.memory_space<vmem>>, vector<8x1xf32>
      tpu.vector_store %arg8[%c0_6, %c0_7], %11 {strides = array<i32>} : memref<8x1xf32, #tpu.memory_space<vmem>>, vector<8x1xf32>,
      %cst_8 = arith.constant 0.000000e+00 : f32
      %13 = vector.broadcast %cst_8 : f32 to vector<8x8xf32>
      %c0_9 = arith.constant 0 : index
      %c0_10 = arith.constant 0 : index
      %14 = vector.load %arg9[%c0_9, %c0_10] : memref<8x8xf32, #tpu.memory_space<vmem>>, vector<8x8xf32>
      tpu.vector_store %arg9[%c0_9, %c0_10], %13 {strides = array<i32>} : memref<8x8xf32, #tpu.memory_space<vmem>>, vector<8x8xf32>,
    } else {
    }
    %3 = arith.cmpi sle, %arg2, %arg1 : i32
    %4 = arith.extui %3 : i1 to i32
    %c0_i32_1 = arith.constant 0 : i32
    %5 = arith.cmpi ne, %4, %c0_i32_1 : i32
    scf.if %5 {
      %c0 = arith.constant 0 : index
      %c0_4 = arith.constant 0 : index
      %c0_5 = arith.constant 0 : index
      %9 = vector.load %arg3[%c0, %c0_4, %c0_5] : memref<1x8x8xf32, #tpu.memory_space<vmem>>, vector<1x8x8xf32>
      %10 = vector.shape_cast %9 : vector<1x8x8xf32> to vector<8x8xf32>
      %cst = arith.constant 0.353553385 : f32
      %11 = vector.broadcast %cst : f32 to vector<8x8xf32>
      %12 = arith.mulf %10, %11 : vector<8x8xf32>
      %c0_6 = arith.constant 0 : index
      %c0_7 = arith.constant 0 : index
      %c0_8 = arith.constant 0 : index
      %13 = vector.load %arg4[%c0_6, %c0_7, %c0_8] : memref<1x8x8xf32, #tpu.memory_space<vmem>>, vector<1x8x8xf32>
      %14 = vector.shape_cast %13 : vector<1x8x8xf32> to vector<8x8xf32>
      %cst_9 = arith.constant dense<0.000000e+00> : vector<8x8xf32>
      %15 = tpu.matmul %12, %14, %cst_9 {dimension_numbers = #tpu.dot_dimension_numbers<[1], [1], [0], [0], [0, 0, 1, 0], [], []>} : vector<8x8xf32>, vector<8x8xf32>, vector<8x8xf32> -> vector<8x8xf32>
      %c8_i32 = arith.constant 8 : i32
      %16 = arith.muli %arg1, %c8_i32 : i32
      %17 = tpu.iota {dimensions = array<i32: 0>} : vector<8x8xi32>
      %18 = vector.broadcast %16 : i32 to vector<8x8xi32>
      %19 = arith.addi %18, %17 : vector<8x8xi32>
      %c8_i32_10 = arith.constant 8 : i32
      %20 = arith.muli %arg2, %c8_i32_10 : i32
      %21 = tpu.iota {dimensions = array<i32: 1>} : vector<8x8xi32>
      %22 = vector.broadcast %20 : i32 to vector<8x8xi32>
      %23 = arith.addi %22, %21 : vector<8x8xi32>
      %24 = arith.cmpi sle, %23, %19 : vector<8x8xi32>
      %cst_11 = arith.constant -1.000000e+30 : f32
      %25 = vector.broadcast %cst_11 : f32 to vector<8x8xf32>
      %26 = arith.select %24, %15, %25 : vector<8x8xi1>, vector<8x8xf32>
      %c0_12 = arith.constant 0 : index
      %c0_13 = arith.constant 0 : index
      %27 = vector.load %arg7[%c0_12, %c0_13] : memref<8x1xf32, #tpu.memory_space<vmem>>, vector<8x1xf32>
      %cst_14 = arith.constant dense<0xFF800000> : vector<8xf32>
      %28 = vector.multi_reduction <maximumf>, %26, %cst_14 [1] : vector<8x8xf32> to vector<8xf32>
      %29 = vector.shape_cast %28 : vector<8xf32> to vector<8x1xf32>
      %30 = arith.maximumf %27, %29 : vector<8x1xf32>
      %31 = arith.subf %27, %30 : vector<8x1xf32>
      %32 = math.exp %31 : vector<8x1xf32>
      %33 = vector.broadcast %30 : vector<8x1xf32> to vector<8x8xf32>
      %34 = arith.subf %26, %33 : vector<8x8xf32>
      %35 = math.exp %34 : vector<8x8xf32>
      %c0_15 = arith.constant 0 : index
      %c0_16 = arith.constant 0 : index
      %36 = vector.load %arg8[%c0_15, %c0_16] : memref<8x1xf32, #tpu.memory_space<vmem>>, vector<8x1xf32>
      %37 = arith.mulf %32, %36 : vector<8x1xf32>
      %cst_17 = arith.constant dense<0.000000e+00> : vector<8xf32>
      %38 = vector.multi_reduction <add>, %35, %cst_17 [1] : vector<8x8xf32> to vector<8xf32>
      %39 = vector.shape_cast %38 : vector<8xf32> to vector<8x1xf32>
      %40 = arith.addf %37, %39 : vector<8x1xf32>
      %c0_18 = arith.constant 0 : index
      %c0_19 = arith.constant 0 : index
      %41 = vector.load %arg8[%c0_18, %c0_19] : memref<8x1xf32, #tpu.memory_space<vmem>>, vector<8x1xf32>
      tpu.vector_store %arg8[%c0_18, %c0_19], %40 {strides = array<i32>} : memref<8x1xf32, #tpu.memory_space<vmem>>, vector<8x1xf32>,
      %c0_20 = arith.constant 0 : index
      %c0_21 = arith.constant 0 : index
      %42 = vector.load %arg9[%c0_20, %c0_21] : memref<8x8xf32, #tpu.memory_space<vmem>>, vector<8x8xf32>
      %43 = vector.broadcast %32 : vector<8x1xf32> to vector<8x8xf32>
      %44 = arith.mulf %43, %42 : vector<8x8xf32>
      %c0_22 = arith.constant 0 : index
      %c0_23 = arith.constant 0 : index
      %c0_24 = arith.constant 0 : index
      %45 = vector.load %arg5[%c0_22, %c0_23, %c0_24] : memref<1x8x8xf32, #tpu.memory_space<vmem>>, vector<1x8x8xf32>
      %46 = vector.shape_cast %45 : vector<1x8x8xf32> to vector<8x8xf32>
      %cst_25 = arith.constant dense<0.000000e+00> : vector<8x8xf32>
      %47 = tpu.matmul %35, %46, %cst_25 {dimension_numbers = #tpu.dot_dimension_numbers<[1], [0], [0], [1], [0, 0, 1, 1], [], []>} : vector<8x8xf32>, vector<8x8xf32>, vector<8x8xf32> -> vector<8x8xf32>
      %48 = arith.addf %44, %47 : vector<8x8xf32>
      %c0_26 = arith.constant 0 : index
      %c0_27 = arith.constant 0 : index
      %49 = vector.load %arg9[%c0_26, %c0_27] : memref<8x8xf32, #tpu.memory_space<vmem>>, vector<8x8xf32>
      tpu.vector_store %arg9[%c0_26, %c0_27], %48 {strides = array<i32>} : memref<8x8xf32, #tpu.memory_space<vmem>>, vector<8x8xf32>,
      %c0_28 = arith.constant 0 : index
      %c0_29 = arith.constant 0 : index
      %50 = vector.load %arg7[%c0_28, %c0_29] : memref<8x1xf32, #tpu.memory_space<vmem>>, vector<8x1xf32>
      tpu.vector_store %arg7[%c0_28, %c0_29], %30 {strides = array<i32>} : memref<8x1xf32, #tpu.memory_space<vmem>>, vector<8x1xf32>,
    } else {
    }
    %c0_i32_2 = arith.constant 0 : i32
    %6 = arith.cmpi eq, %arg2, %c0_i32_2 : i32
    %7 = arith.extui %6 : i1 to i32
    %c0_i32_3 = arith.constant 0 : i32
    %8 = arith.cmpi ne, %7, %c0_i32_3 : i32
    scf.if %8 {
      %c0 = arith.constant 0 : index
      %c0_4 = arith.constant 0 : index
      %9 = vector.load %arg8[%c0, %c0_4] : memref<8x1xf32, #tpu.memory_space<vmem>>, vector<8x1xf32>
      %10 = tpu.reciprocal %9 : vector<8x1xf32> -> vector<8x1xf32>
      %c0_5 = arith.constant 0 : index
      %c0_6 = arith.constant 0 : index
      %11 = vector.load %arg9[%c0_5, %c0_6] : memref<8x8xf32, #tpu.memory_space<vmem>>, vector<8x8xf32>
      %12 = vector.broadcast %10 : vector<8x1xf32> to vector<8x8xf32>
      %13 = arith.mulf %11, %12 : vector<8x8xf32>
      %c0_7 = arith.constant 0 : index
      %c0_8 = arith.constant 0 : index
      %c0_9 = arith.constant 0 : index
      %14 = vector.load %arg6[%c0_7, %c0_8, %c0_9] : memref<1x8x8xf32, #tpu.memory_space<vmem>>, vector<1x8x8xf32>
      %15 = vector.shape_cast %14 : vector<1x8x8xf32> to vector<8x8xf32>
      %16 = vector.shape_cast %13 : vector<8x8xf32> to vector<1x8x8xf32>
      tpu.vector_store %arg6[%c0_7, %c0_8, %c0_9], %16 {strides = array<i32>} : memref<1x8x8xf32, #tpu.memory_space<vmem>>, vector<1x8x8xf32>,
    } else {
    }
    return
  }
  func.func @transform_0(%arg0: i32, %arg1: i32, %arg2: i32) -> (i32, i32, i32) {
    %c0_i32 = arith.constant 0 : i32
    %c0_i32_0 = arith.constant 0 : i32
    return %arg0, %arg1, %c0_i32 : i32, i32, i32
  }
  func.func @transform_1(%arg0: i32, %arg1: i32, %arg2: i32) -> (i32, i32, i32) {
    %c0_i32 = arith.constant 0 : i32
    %c0_i32_0 = arith.constant 0 : i32
    return %arg0, %arg2, %c0_i32 : i32, i32, i32
  }
  func.func @transform_2(%arg0: i32, %arg1: i32, %arg2: i32) -> (i32, i32, i32) {
    %c0_i32 = arith.constant 0 : i32
    %c0_i32_0 = arith.constant 0 : i32
    return %arg0, %arg2, %c0_i32 : i32, i32, i32
  }
  func.func @transform_3(%arg0: i32, %arg1: i32, %arg2: i32) -> (i32, i32, i32) {
    %c0_i32 = arith.constant 0 : i32
    %c0_i32_0 = arith.constant 0 : i32
    return %arg0, %arg1, %c0_i32 : i32, i32, i32
  }
}

module attributes {stable_mosaic.version = 11 : i64} {
  func.func @_linear_kernel(%arg0: i32, %arg1: i32, %arg2: i32, %arg3: memref<16x32xf32, #tpu.memory_space<vmem>>, %arg4: memref<32x32xf32, #tpu.memory_space<vmem>>, %arg5: memref<1x32xf32, #tpu.memory_space<vmem>>, %arg6: memref<16x32xf32, #tpu.memory_space<vmem>>, %arg7: memref<16x32xf32, #tpu.memory_space<vmem>>, %arg8: memref<16x32xf32, #tpu.memory_space<vmem>>) attributes {dimension_semantics = [#tpu.dimension_semantics<parallel>, #tpu.dimension_semantics<parallel>, #tpu.dimension_semantics<arbitrary>], iteration_bounds = array<i64: 1, 1, 1>, scalar_prefetch = 0 : i64, scratch_operands = 1 : i64, tpu.core_type = #tpu.core_type<tc>, window_params = [{transform_indices = @transform_0, window_bounds = array<i64: 16, 32>}, {transform_indices = @transform_1, window_bounds = array<i64: 32, 32>}, {transform_indices = @transform_2, window_bounds = array<i64: 1, 32>}, {transform_indices = @transform_3, window_bounds = array<i64: 16, 32>}, {transform_indices = @transform_4, window_bounds = array<i64: 16, 32>}]} {
    %c0_i32 = arith.constant 0 : i32
    %0 = arith.cmpi eq, %arg2, %c0_i32 : i32
    %1 = arith.extui %0 : i1 to i32
    %c0_i32_0 = arith.constant 0 : i32
    %2 = arith.cmpi ne, %1, %c0_i32_0 : i32
    scf.if %2 {
      %cst_10 = arith.constant 0.000000e+00 : f32
      %12 = vector.broadcast %cst_10 : f32 to vector<16x32xf32>
      %c0_11 = arith.constant 0 : index
      %c0_12 = arith.constant 0 : index
      %13 = vector.load %arg8[%c0_11, %c0_12] : memref<16x32xf32, #tpu.memory_space<vmem>>, vector<16x32xf32>
      tpu.vector_store %arg8[%c0_11, %c0_12], %12 {strides = array<i32>} : memref<16x32xf32, #tpu.memory_space<vmem>>, vector<16x32xf32>,
    } else {
    }
    %c0 = arith.constant 0 : index
    %c0_1 = arith.constant 0 : index
    %3 = vector.load %arg8[%c0, %c0_1] : memref<16x32xf32, #tpu.memory_space<vmem>>, vector<16x32xf32>
    %c0_2 = arith.constant 0 : index
    %c0_3 = arith.constant 0 : index
    %4 = vector.load %arg3[%c0_2, %c0_3] : memref<16x32xf32, #tpu.memory_space<vmem>>, vector<16x32xf32>
    %c0_4 = arith.constant 0 : index
    %c0_5 = arith.constant 0 : index
    %5 = vector.load %arg4[%c0_4, %c0_5] : memref<32x32xf32, #tpu.memory_space<vmem>>, vector<32x32xf32>
    %cst = arith.constant dense<0.000000e+00> : vector<16x32xf32>
    %6 = tpu.matmul %4, %5, %cst {dimension_numbers = #tpu.dot_dimension_numbers<[1], [0], [0], [1], [0, 0, 1, 1], [], []>} : vector<16x32xf32>, vector<32x32xf32>, vector<16x32xf32> -> vector<16x32xf32>
    %7 = arith.addf %3, %6 : vector<16x32xf32>
    %c0_6 = arith.constant 0 : index
    %c0_7 = arith.constant 0 : index
    %8 = vector.load %arg8[%c0_6, %c0_7] : memref<16x32xf32, #tpu.memory_space<vmem>>, vector<16x32xf32>
    tpu.vector_store %arg8[%c0_6, %c0_7], %7 {strides = array<i32>} : memref<16x32xf32, #tpu.memory_space<vmem>>, vector<16x32xf32>,
    %c0_i32_8 = arith.constant 0 : i32
    %9 = arith.cmpi eq, %arg2, %c0_i32_8 : i32
    %10 = arith.extui %9 : i1 to i32
    %c0_i32_9 = arith.constant 0 : i32
    %11 = arith.cmpi ne, %10, %c0_i32_9 : i32
    scf.if %11 {
      %c0_10 = arith.constant 0 : index
      %c0_11 = arith.constant 0 : index
      %12 = vector.load %arg8[%c0_10, %c0_11] : memref<16x32xf32, #tpu.memory_space<vmem>>, vector<16x32xf32>
      %c0_12 = arith.constant 0 : index
      %c0_13 = arith.constant 0 : index
      %13 = vector.load %arg5[%c0_12, %c0_13] : memref<1x32xf32, #tpu.memory_space<vmem>>, vector<1x32xf32>
      %14 = vector.broadcast %13 : vector<1x32xf32> to vector<16x32xf32>
      %15 = arith.addf %12, %14 : vector<16x32xf32>
      %c0_14 = arith.constant 0 : index
      %c0_15 = arith.constant 0 : index
      %16 = vector.load %arg6[%c0_14, %c0_15] : memref<16x32xf32, #tpu.memory_space<vmem>>, vector<16x32xf32>
      %17 = arith.addf %15, %16 : vector<16x32xf32>
      %c0_16 = arith.constant 0 : index
      %c0_17 = arith.constant 0 : index
      %18 = vector.load %arg7[%c0_16, %c0_17] : memref<16x32xf32, #tpu.memory_space<vmem>>, vector<16x32xf32>
      tpu.vector_store %arg7[%c0_16, %c0_17], %17 {strides = array<i32>} : memref<16x32xf32, #tpu.memory_space<vmem>>, vector<16x32xf32>,
    } else {
    }
    return
  }
  func.func @transform_0(%arg0: i32, %arg1: i32, %arg2: i32) -> (i32, i32) {
    %c0_i32 = arith.constant 0 : i32
    return %arg0, %arg2 : i32, i32
  }
  func.func @transform_1(%arg0: i32, %arg1: i32, %arg2: i32) -> (i32, i32) {
    %c0_i32 = arith.constant 0 : i32
    return %arg2, %arg1 : i32, i32
  }
  func.func @transform_2(%arg0: i32, %arg1: i32, %arg2: i32) -> (i32, i32) {
    %c0_i32 = arith.constant 0 : i32
    %c0_i32_0 = arith.constant 0 : i32
    return %c0_i32, %arg1 : i32, i32
  }
  func.func @transform_3(%arg0: i32, %arg1: i32, %arg2: i32) -> (i32, i32) {
    %c0_i32 = arith.constant 0 : i32
    return %arg0, %arg1 : i32, i32
  }
  func.func @transform_4(%arg0: i32, %arg1: i32, %arg2: i32) -> (i32, i32) {
    %c0_i32 = arith.constant 0 : i32
    return %arg0, %arg1 : i32, i32
  }
}

module attributes {stable_mosaic.version = 11 : i64} {
  func.func @_linear_kernel(%arg0: i32, %arg1: i32, %arg2: i32, %arg3: memref<16x32xf32, #tpu.memory_space<vmem>>, %arg4: memref<32x128xf32, #tpu.memory_space<vmem>>, %arg5: memref<1x128xf32, #tpu.memory_space<vmem>>, %arg6: memref<16x128xf32, #tpu.memory_space<vmem>>, %arg7: memref<16x128xf32, #tpu.memory_space<vmem>>) attributes {dimension_semantics = [#tpu.dimension_semantics<parallel>, #tpu.dimension_semantics<parallel>, #tpu.dimension_semantics<arbitrary>], iteration_bounds = array<i64: 1, 1, 1>, scalar_prefetch = 0 : i64, scratch_operands = 1 : i64, tpu.core_type = #tpu.core_type<tc>, window_params = [{transform_indices = @transform_0, window_bounds = array<i64: 16, 32>}, {transform_indices = @transform_1, window_bounds = array<i64: 32, 128>}, {transform_indices = @transform_2, window_bounds = array<i64: 1, 128>}, {transform_indices = @transform_3, window_bounds = array<i64: 16, 128>}]} {
    %c0_i32 = arith.constant 0 : i32
    %0 = arith.cmpi eq, %arg2, %c0_i32 : i32
    %1 = arith.extui %0 : i1 to i32
    %c0_i32_0 = arith.constant 0 : i32
    %2 = arith.cmpi ne, %1, %c0_i32_0 : i32
    scf.if %2 {
      %cst_10 = arith.constant 0.000000e+00 : f32
      %12 = vector.broadcast %cst_10 : f32 to vector<16x128xf32>
      %c0_11 = arith.constant 0 : index
      %c0_12 = arith.constant 0 : index
      %13 = vector.load %arg7[%c0_11, %c0_12] : memref<16x128xf32, #tpu.memory_space<vmem>>, vector<16x128xf32>
      tpu.vector_store %arg7[%c0_11, %c0_12], %12 {strides = array<i32>} : memref<16x128xf32, #tpu.memory_space<vmem>>, vector<16x128xf32>,
    } else {
    }
    %c0 = arith.constant 0 : index
    %c0_1 = arith.constant 0 : index
    %3 = vector.load %arg7[%c0, %c0_1] : memref<16x128xf32, #tpu.memory_space<vmem>>, vector<16x128xf32>
    %c0_2 = arith.constant 0 : index
    %c0_3 = arith.constant 0 : index
    %4 = vector.load %arg3[%c0_2, %c0_3] : memref<16x32xf32, #tpu.memory_space<vmem>>, vector<16x32xf32>
    %c0_4 = arith.constant 0 : index
    %c0_5 = arith.constant 0 : index
    %5 = vector.load %arg4[%c0_4, %c0_5] : memref<32x128xf32, #tpu.memory_space<vmem>>, vector<32x128xf32>
    %cst = arith.constant dense<0.000000e+00> : vector<16x128xf32>
    %6 = tpu.matmul %4, %5, %cst {dimension_numbers = #tpu.dot_dimension_numbers<[1], [0], [0], [1], [0, 0, 1, 1], [], []>} : vector<16x32xf32>, vector<32x128xf32>, vector<16x128xf32> -> vector<16x128xf32>
    %7 = arith.addf %3, %6 : vector<16x128xf32>
    %c0_6 = arith.constant 0 : index
    %c0_7 = arith.constant 0 : index
    %8 = vector.load %arg7[%c0_6, %c0_7] : memref<16x128xf32, #tpu.memory_space<vmem>>, vector<16x128xf32>
    tpu.vector_store %arg7[%c0_6, %c0_7], %7 {strides = array<i32>} : memref<16x128xf32, #tpu.memory_space<vmem>>, vector<16x128xf32>,
    %c0_i32_8 = arith.constant 0 : i32
    %9 = arith.cmpi eq, %arg2, %c0_i32_8 : i32
    %10 = arith.extui %9 : i1 to i32
    %c0_i32_9 = arith.constant 0 : i32
    %11 = arith.cmpi ne, %10, %c0_i32_9 : i32
    scf.if %11 {
      %c0_10 = arith.constant 0 : index
      %c0_11 = arith.constant 0 : index
      %12 = vector.load %arg7[%c0_10, %c0_11] : memref<16x128xf32, #tpu.memory_space<vmem>>, vector<16x128xf32>
      %c0_12 = arith.constant 0 : index
      %c0_13 = arith.constant 0 : index
      %13 = vector.load %arg5[%c0_12, %c0_13] : memref<1x128xf32, #tpu.memory_space<vmem>>, vector<1x128xf32>
      %14 = vector.broadcast %13 : vector<1x128xf32> to vector<16x128xf32>
      %15 = arith.addf %12, %14 : vector<16x128xf32>
      %cst_14 = arith.constant 5.000000e-01 : f32
      %16 = vector.broadcast %cst_14 : f32 to vector<16x128xf32>
      %17 = arith.mulf %16, %15 : vector<16x128xf32>
      %cst_15 = arith.constant 4.471500e-02 : f32
      %18 = vector.broadcast %cst_15 : f32 to vector<16x128xf32>
      %19 = arith.mulf %18, %15 : vector<16x128xf32>
      %20 = arith.mulf %19, %15 : vector<16x128xf32>
      %21 = arith.mulf %20, %15 : vector<16x128xf32>
      %22 = arith.addf %15, %21 : vector<16x128xf32>
      %cst_16 = arith.constant 0.797884583 : f32
      %23 = vector.broadcast %cst_16 : f32 to vector<16x128xf32>
      %24 = arith.mulf %23, %22 : vector<16x128xf32>
      %25 = math.tanh %24 : vector<16x128xf32>
      %cst_17 = arith.constant 1.000000e+00 : f32
      %26 = vector.broadcast %cst_17 : f32 to vector<16x128xf32>
      %27 = arith.addf %26, %25 : vector<16x128xf32>
      %28 = arith.mulf %17, %27 : vector<16x128xf32>
      %c0_18 = arith.constant 0 : index
      %c0_19 = arith.constant 0 : index
      %29 = vector.load %arg6[%c0_18, %c0_19] : memref<16x128xf32, #tpu.memory_space<vmem>>, vector<16x128xf32>
      tpu.vector_store %arg6[%c0_18, %c0_19], %28 {strides = array<i32>} : memref<16x128xf32, #tpu.memory_space<vmem>>, vector<16x128xf32>,
    } else {
    }
    return
  }
  func.func @transform_0(%arg0: i32, %arg1: i32, %arg2: i32) -> (i32, i32) {
    %c0_i32 = arith.constant 0 : i32
    return %arg0, %arg2 : i32, i32
  }
  func.func @transform_1(%arg0: i32, %arg1: i32, %arg2: i32) -> (i32, i32) {
    %c0_i32 = arith.constant 0 : i32
    return %arg2, %arg1 : i32, i32
  }
  func.func @transform_2(%arg0: i32, %arg1: i32, %arg2: i32) -> (i32, i32) {
    %c0_i32 = arith.constant 0 : i32
    %c0_i32_0 = arith.constant 0 : i32
    return %c0_i32, %arg1 : i32, i32
  }
  func.func @transform_3(%arg0: i32, %arg1: i32, %arg2: i32) -> (i32, i32) {
    %c0_i32 = arith.constant 0 : i32
    return %arg0, %arg1 : i32, i32
  }
}

module attributes {stable_mosaic.version = 11 : i64} {
  func.func @_linear_kernel(%arg0: i32, %arg1: i32, %arg2: i32, %arg3: memref<16x128xf32, #tpu.memory_space<vmem>>, %arg4: memref<128x32xf32, #tpu.memory_space<vmem>>, %arg5: memref<1x32xf32, #tpu.memory_space<vmem>>, %arg6: memref<16x32xf32, #tpu.memory_space<vmem>>, %arg7: memref<16x32xf32, #tpu.memory_space<vmem>>, %arg8: memref<16x32xf32, #tpu.memory_space<vmem>>) attributes {dimension_semantics = [#tpu.dimension_semantics<parallel>, #tpu.dimension_semantics<parallel>, #tpu.dimension_semantics<arbitrary>], iteration_bounds = array<i64: 1, 1, 1>, scalar_prefetch = 0 : i64, scratch_operands = 1 : i64, tpu.core_type = #tpu.core_type<tc>, window_params = [{transform_indices = @transform_0, window_bounds = array<i64: 16, 128>}, {transform_indices = @transform_1, window_bounds = array<i64: 128, 32>}, {transform_indices = @transform_2, window_bounds = array<i64: 1, 32>}, {transform_indices = @transform_3, window_bounds = array<i64: 16, 32>}, {transform_indices = @transform_4, window_bounds = array<i64: 16, 32>}]} {
    %c0_i32 = arith.constant 0 : i32
    %0 = arith.cmpi eq, %arg2, %c0_i32 : i32
    %1 = arith.extui %0 : i1 to i32
    %c0_i32_0 = arith.constant 0 : i32
    %2 = arith.cmpi ne, %1, %c0_i32_0 : i32
    scf.if %2 {
      %cst_10 = arith.constant 0.000000e+00 : f32
      %12 = vector.broadcast %cst_10 : f32 to vector<16x32xf32>
      %c0_11 = arith.constant 0 : index
      %c0_12 = arith.constant 0 : index
      %13 = vector.load %arg8[%c0_11, %c0_12] : memref<16x32xf32, #tpu.memory_space<vmem>>, vector<16x32xf32>
      tpu.vector_store %arg8[%c0_11, %c0_12], %12 {strides = array<i32>} : memref<16x32xf32, #tpu.memory_space<vmem>>, vector<16x32xf32>,
    } else {
    }
    %c0 = arith.constant 0 : index
    %c0_1 = arith.constant 0 : index
    %3 = vector.load %arg8[%c0, %c0_1] : memref<16x32xf32, #tpu.memory_space<vmem>>, vector<16x32xf32>
    %c0_2 = arith.constant 0 : index
    %c0_3 = arith.constant 0 : index
    %4 = vector.load %arg3[%c0_2, %c0_3] : memref<16x128xf32, #tpu.memory_space<vmem>>, vector<16x128xf32>
    %c0_4 = arith.constant 0 : index
    %c0_5 = arith.constant 0 : index
    %5 = vector.load %arg4[%c0_4, %c0_5] : memref<128x32xf32, #tpu.memory_space<vmem>>, vector<128x32xf32>
    %cst = arith.constant dense<0.000000e+00> : vector<16x32xf32>
    %6 = tpu.matmul %4, %5, %cst {dimension_numbers = #tpu.dot_dimension_numbers<[1], [0], [0], [1], [0, 0, 1, 1], [], []>} : vector<16x128xf32>, vector<128x32xf32>, vector<16x32xf32> -> vector<16x32xf32>
    %7 = arith.addf %3, %6 : vector<16x32xf32>
    %c0_6 = arith.constant 0 : index
    %c0_7 = arith.constant 0 : index
    %8 = vector.load %arg8[%c0_6, %c0_7] : memref<16x32xf32, #tpu.memory_space<vmem>>, vector<16x32xf32>
    tpu.vector_store %arg8[%c0_6, %c0_7], %7 {strides = array<i32>} : memref<16x32xf32, #tpu.memory_space<vmem>>, vector<16x32xf32>,
    %c0_i32_8 = arith.constant 0 : i32
    %9 = arith.cmpi eq, %arg2, %c0_i32_8 : i32
    %10 = arith.extui %9 : i1 to i32
    %c0_i32_9 = arith.constant 0 : i32
    %11 = arith.cmpi ne, %10, %c0_i32_9 : i32
    scf.if %11 {
      %c0_10 = arith.constant 0 : index
      %c0_11 = arith.constant 0 : index
      %12 = vector.load %arg8[%c0_10, %c0_11] : memref<16x32xf32, #tpu.memory_space<vmem>>, vector<16x32xf32>
      %c0_12 = arith.constant 0 : index
      %c0_13 = arith.constant 0 : index
      %13 = vector.load %arg5[%c0_12, %c0_13] : memref<1x32xf32, #tpu.memory_space<vmem>>, vector<1x32xf32>
      %14 = vector.broadcast %13 : vector<1x32xf32> to vector<16x32xf32>
      %15 = arith.addf %12, %14 : vector<16x32xf32>
      %c0_14 = arith.constant 0 : index
      %c0_15 = arith.constant 0 : index
      %16 = vector.load %arg6[%c0_14, %c0_15] : memref<16x32xf32, #tpu.memory_space<vmem>>, vector<16x32xf32>
      %17 = arith.addf %15, %16 : vector<16x32xf32>
      %c0_16 = arith.constant 0 : index
      %c0_17 = arith.constant 0 : index
      %18 = vector.load %arg7[%c0_16, %c0_17] : memref<16x32xf32, #tpu.memory_space<vmem>>, vector<16x32xf32>
      tpu.vector_store %arg7[%c0_16, %c0_17], %17 {strides = array<i32>} : memref<16x32xf32, #tpu.memory_space<vmem>>, vector<16x32xf32>,
    } else {
    }
    return
  }
  func.func @transform_0(%arg0: i32, %arg1: i32, %arg2: i32) -> (i32, i32) {
    %c0_i32 = arith.constant 0 : i32
    return %arg0, %arg2 : i32, i32
  }
  func.func @transform_1(%arg0: i32, %arg1: i32, %arg2: i32) -> (i32, i32) {
    %c0_i32 = arith.constant 0 : i32
    return %arg2, %arg1 : i32, i32
  }
  func.func @transform_2(%arg0: i32, %arg1: i32, %arg2: i32) -> (i32, i32) {
    %c0_i32 = arith.constant 0 : i32
    %c0_i32_0 = arith.constant 0 : i32
    return %c0_i32, %arg1 : i32, i32
  }
  func.func @transform_3(%arg0: i32, %arg1: i32, %arg2: i32) -> (i32, i32) {
    %c0_i32 = arith.constant 0 : i32
    return %arg0, %arg1 : i32, i32
  }
  func.func @transform_4(%arg0: i32, %arg1: i32, %arg2: i32) -> (i32, i32) {
    %c0_i32 = arith.constant 0 : i32
    return %arg0, %arg1 : i32, i32
  }
}

module attributes {stable_mosaic.version = 11 : i64} {
  func.func @_linear_kernel(%arg0: i32, %arg1: i32, %arg2: i32, %arg3: memref<16x32xf32, #tpu.memory_space<vmem>>, %arg4: memref<32x128xf32, #tpu.memory_space<vmem>>, %arg5: memref<16x128xf32, #tpu.memory_space<vmem>>, %arg6: memref<16x128xf32, #tpu.memory_space<vmem>>) attributes {dimension_semantics = [#tpu.dimension_semantics<parallel>, #tpu.dimension_semantics<parallel>, #tpu.dimension_semantics<arbitrary>], iteration_bounds = array<i64: 1, 1, 1>, scalar_prefetch = 0 : i64, scratch_operands = 1 : i64, tpu.core_type = #tpu.core_type<tc>, window_params = [{transform_indices = @transform_0, window_bounds = array<i64: 16, 32>}, {transform_indices = @transform_1, window_bounds = array<i64: 32, 128>}, {transform_indices = @transform_2, window_bounds = array<i64: 16, 128>}]} {
    %c0_i32 = arith.constant 0 : i32
    %0 = arith.cmpi eq, %arg2, %c0_i32 : i32
    %1 = arith.extui %0 : i1 to i32
    %c0_i32_0 = arith.constant 0 : i32
    %2 = arith.cmpi ne, %1, %c0_i32_0 : i32
    scf.if %2 {
      %cst_10 = arith.constant 0.000000e+00 : f32
      %12 = vector.broadcast %cst_10 : f32 to vector<16x128xf32>
      %c0_11 = arith.constant 0 : index
      %c0_12 = arith.constant 0 : index
      %13 = vector.load %arg6[%c0_11, %c0_12] : memref<16x128xf32, #tpu.memory_space<vmem>>, vector<16x128xf32>
      tpu.vector_store %arg6[%c0_11, %c0_12], %12 {strides = array<i32>} : memref<16x128xf32, #tpu.memory_space<vmem>>, vector<16x128xf32>,
    } else {
    }
    %c0 = arith.constant 0 : index
    %c0_1 = arith.constant 0 : index
    %3 = vector.load %arg6[%c0, %c0_1] : memref<16x128xf32, #tpu.memory_space<vmem>>, vector<16x128xf32>
    %c0_2 = arith.constant 0 : index
    %c0_3 = arith.constant 0 : index
    %4 = vector.load %arg3[%c0_2, %c0_3] : memref<16x32xf32, #tpu.memory_space<vmem>>, vector<16x32xf32>
    %c0_4 = arith.constant 0 : index
    %c0_5 = arith.constant 0 : index
    %5 = vector.load %arg4[%c0_4, %c0_5] : memref<32x128xf32, #tpu.memory_space<vmem>>, vector<32x128xf32>
    %cst = arith.constant dense<0.000000e+00> : vector<16x128xf32>
    %6 = tpu.matmul %4, %5, %cst {dimension_numbers = #tpu.dot_dimension_numbers<[1], [0], [0], [1], [0, 0, 1, 1], [], []>} : vector<16x32xf32>, vector<32x128xf32>, vector<16x128xf32> -> vector<16x128xf32>
    %7 = arith.addf %3, %6 : vector<16x128xf32>
    %c0_6 = arith.constant 0 : index
    %c0_7 = arith.constant 0 : index
    %8 = vector.load %arg6[%c0_6, %c0_7] : memref<16x128xf32, #tpu.memory_space<vmem>>, vector<16x128xf32>
    tpu.vector_store %arg6[%c0_6, %c0_7], %7 {strides = array<i32>} : memref<16x128xf32, #tpu.memory_space<vmem>>, vector<16x128xf32>,
    %c0_i32_8 = arith.constant 0 : i32
    %9 = arith.cmpi eq, %arg2, %c0_i32_8 : i32
    %10 = arith.extui %9 : i1 to i32
    %c0_i32_9 = arith.constant 0 : i32
    %11 = arith.cmpi ne, %10, %c0_i32_9 : i32
    scf.if %11 {
      %c0_10 = arith.constant 0 : index
      %c0_11 = arith.constant 0 : index
      %12 = vector.load %arg6[%c0_10, %c0_11] : memref<16x128xf32, #tpu.memory_space<vmem>>, vector<16x128xf32>
      %c0_12 = arith.constant 0 : index
      %c0_13 = arith.constant 0 : index
      %13 = vector.load %arg5[%c0_12, %c0_13] : memref<16x128xf32, #tpu.memory_space<vmem>>, vector<16x128xf32>
      tpu.vector_store %arg5[%c0_12, %c0_13], %12 {strides = array<i32>} : memref<16x128xf32, #tpu.memory_space<vmem>>, vector<16x128xf32>,
    } else {
    }
    return
  }
  func.func @transform_0(%arg0: i32, %arg1: i32, %arg2: i32) -> (i32, i32) {
    %c0_i32 = arith.constant 0 : i32
    return %arg0, %arg2 : i32, i32
  }
  func.func @transform_1(%arg0: i32, %arg1: i32, %arg2: i32) -> (i32, i32) {
    %c0_i32 = arith.constant 0 : i32
    return %arg2, %arg1 : i32, i32
  }
  func.func @transform_2(%arg0: i32, %arg1: i32, %arg2: i32) -> (i32, i32) {
    %c0_i32 = arith.constant 0 : i32
    return %arg0, %arg1 : i32, i32
  }
}

</mosaic_0001>

<bundles_post_ra>
// kernel: gpt_forward.17
= control target key start
LH: loop header
LB: loop body
LE: loop exit
PB: predicated region body
PF: predicated region fallthrough
CT: control target
= control target key end

     0   :  { %7 = vsyncpa [#allocation4], 0  ;;  %s344_s0 = inlined_call_operand.hbm [shape: f32[16,32], index: 0, kind: input, shape index: {}]   ;;  %s345_s1 = inlined_call_operand.hbm [shape: f32[32,96], index: 1, kind: input, shape index: {}]   ;;  %s346_s2 = inlined_call_operand.hbm [shape: f32[16,96], index: 2, kind: output, shape index: {}]  }
   0x1   :  { %8 = vsyncpa [#allocation7], 0 }
   0x2   :  { %9 = vsyncpa [#allocation5], 0  ;;  %s272_s9 = smov [#allocation3]   ;;  %s200_s13 = scalar_lea.hbm %s344_s0, 256 }
   0x3   :  { %s15_s10 = sshll.u32 %s272_s9, 4  ;;  %p201_p0 = scmp.ne.s32.totalorder %s344_s0, %s200_s13  ;;  %s16_s10 = int_to_ptr.vmem [resolvable:$true] %s15_s10 }
   0x4   :  { %p204_p1 = scmp.lt.u32.totalorder %s200_s13, %s344_s0 }
   0x6   :  { %p206_p2 = pnand %p204_p1, %p201_p0 }
   0x8   :  { %209 = shalt.err (!%p206_p2)
}
   0x9   :  { %s210_s18 = scalar_lea.vmem %s16_s10, 256  ;;  %p215_p4 = scmp.lt.s32.totalorder %s16_s10, %s16_s10 }
   0xa   :  { %p211_p3 = scmp.ne.s32.totalorder %s16_s10, %s210_s18  ;;  %p216_p5 = scmp.lt.s32.totalorder %s210_s18, %s210_s18 }
   0xc   :  { %p217_p6 = por %p216_p5, %p215_p4 }
   0xe   :  { %p218_p7 = pnand %p217_p6, %p211_p3 }
  0x10   :  { %221 = shalt.err (!%p218_p7)
}
  0x11   :  { %s273_s19 = smov 128   ;;  %s274_s20 = smov 8  }
  0x12   :  { %21 = dma.hbm_to_vmem [thread:$0]  %s344_s0, 256, %s16_s10, [#allocation4], %s273_s19, %s273_s19, %s274_s20  }
  0x13   :  { %s275_s23 = smov [#allocation6]   ;;  %s222_s27 = scalar_lea.hbm %s345_s1, 512 }
  0x14   :  { %s27_s24 = sshll.u32 %s275_s23, 4  ;;  %p223_p8 = scmp.ne.s32.totalorder %s345_s1, %s222_s27  ;;  %s28_s24 = int_to_ptr.vmem [resolvable:$true] %s27_s24 }
  0x15   :  { %p226_p9 = scmp.lt.u32.totalorder %s222_s27, %s345_s1 }
  0x17   :  { %p228_p10 = pnand %p226_p9, %p223_p8 }
  0x19   :  { %231 = shalt.err (!%p228_p10)
}
  0x1a   :  { %s232_s4 = scalar_lea.vmem %s28_s24, 512  ;;  %p237_p12 = scmp.lt.s32.totalorder %s28_s24, %s28_s24 }
  0x1b   :  { %p233_p11 = scmp.ne.s32.totalorder %s28_s24, %s232_s4  ;;  %p238_p13 = scmp.lt.s32.totalorder %s232_s4, %s232_s4 }
  0x1d   :  { %p239_p0 = por %p238_p13, %p237_p12 }
  0x1f   :  { %p240_p1 = pnand %p239_p0, %p233_p11 }
  0x21   :  { %243 = shalt.err (!%p240_p1)
}
  0x22   :  { %33 = dma.hbm_to_vmem [thread:$0]  %s345_s1, 512, %s28_s24, [#allocation7], %s273_s19, %s273_s19, %s274_s20  }
  0x23   :  { %266 = dma.done.wait [#allocation4], 256  }
  0x24   :  { %267 = vsyncadd [#allocation4], 4294967040 }
  0x25   :  { %268 = dma.done.wait [#allocation7], 512  }
  0x26   :  { %269 = vsyncadd [#allocation7], 4294966784  ;;  %vm44_vm0 = vcmask 785408   ;;  %v276_v0 = vmov 0.0   ;;  %vm55_vm1 = vcmask 261120   ;;  %v51_v1 = vld [vmem:[#allocation6] sm:$0xff] }
  0x27   :  { %46 = vst.msk [vmem:[#allocation2 + $0x8] sm:$0xff] %vm44_vm0, %v276_v0  ;;  %45 = vst.msk [vmem:[#allocation2] sm:$0xff] %vm44_vm0, %v276_v0  ;;  %v52_v2 = vld [vmem:[#allocation6 + $0x8] sm:$0xff]  ;;  %v53_v3 = vld [vmem:[#allocation6 + $0x10] sm:$0xff]  ;;  %s277_s1 = smov [#allocation8]  }
  0x28   :  { %v186_v4 = vpack.c.bf16 %v52_v2, %v51_v1  ;;  %v54_v5 = vld [vmem:[#allocation6 + $0x18] sm:$0xff]  ;;  %v49_v6 = vld [vmem:[#allocation3] sm:$0xff]  ;;  %s154_s6 = sshll.u32 %s277_s1, 4  ;;  %s155_s6 = int_to_ptr.vmem [resolvable:$true] %s154_s6 }
  0x29   :  { %v190_v7 = vpack.c.bf16 %v54_v5, %v53_v3  ;;  %183 = vmatprep.mubr.msk.f32.mxu0 %vm55_vm1, %v49_v6  ;;  %v50_v8 = vld [vmem:[#allocation3 + $0x8] sm:$0xff]  ;;  %s244_s7 = scalar_lea.vmem %s155_s6, 256  ;;  %p249_p3 = scmp.lt.s32.totalorder %s155_s6, %s155_s6 }
  0x2a   :  { %187 = vmatprep.subr.bf16.mxu0 %v186_v4  ;;  %p245_p2 = scmp.ne.s32.totalorder %s155_s6, %s244_s7  ;;  %p250_p4 = scmp.lt.s32.totalorder %s244_s7, %s244_s7 }
  0x2b   :  { %189 = vmatpush3.bf16.msra.mxu0 %v186_v4 }
  0x2c   :  { %191 = vmatprep.subr.bf16.mxu0 %v190_v7  ;;  %p251_p5 = por %p250_p4, %p249_p3 }
  0x2e   :  { %v48_v9 = vld [vmem:[#allocation2 + $0x8] sm:$0xff]  ;;  %v47_v10 = vld [vmem:[#allocation2] sm:$0xff]  ;;  %p252_p6 = pnand %p251_p5, %p245_p2 }
  0x2f   :  { %193 = vmatpush3.bf16.msra.mxu0 %v190_v7 }
  0x32   :  { %184 = vmatmul.mubr.msk.f32.vlgmr.msra.gmra.mrb[0].mxu0 %vm55_vm1, %v50_v8 }
 0x105   :  { %v185_v11 = vpop.f32.mrb[0].mxu0 }
 0x106   :  { %v138_v12 = vadd.f32 %v185_v11, %v48_v9  ;;  %v128_v13 = vpop.f32.mrb[1].mxu0 }
 0x107   :  { %v137_v14 = vadd.f32 %v128_v13, %v47_v10 }
 0x108   :  { %141 = vst.msk [vmem:[#allocation2 + $0x8] sm:$0xff] %vm44_vm0, %v138_v12 }
 0x109   :  { %140 = vst.msk [vmem:[#allocation2] sm:$0xff] %vm44_vm0, %v137_v14 }
 0x10f   :  { %v146_v15 = vld [vmem:[#allocation2 + $0x8] sm:$0xff] }
 0x110   :  { %v145_v16 = vld [vmem:[#allocation2] sm:$0xff]  ;;  %148 = vst.msk [vmem:[#allocation8 + $0x8] sm:$0xff] %vm44_vm0, %v146_v15 }
 0x111   :  { %147 = vst.msk [vmem:[#allocation8] sm:$0xff] %vm44_vm0, %v145_v16 }
 0x112   :  { %255 = shalt.err (!%p252_p6)
}
 0x113   :  { %s256_s10 = scalar_lea.hbm %s346_s2, 256 }
 0x114   :  { %p257_p7 = scmp.ne.s32.totalorder %s346_s2, %s256_s10  ;;  %p260_p8 = scmp.lt.u32.totalorder %s256_s10, %s346_s2 }
 0x116   :  { %p262_p9 = pnand %p260_p8, %p257_p7 }
 0x118   :  { %265 = shalt.err (!%p262_p9)
}
 0x119   :  { %160 = dma.vmem_to_hbm [thread:$0]  %s155_s6, 256, %s346_s2, [#allocation5], %s273_s19, %s273_s19, %s274_s20  }
 0x11a   :  { %270 = dma.done.wait [#allocation5], 256  }
 0x11b   :  { %271 = vsyncadd [#allocation5], 4294967040 }
 0x11c   :  { %164 = vsyncpa [#allocation4], 1 }
 0x11d   :  { %165 = vsyncpa [#allocation7], 1 }
 0x11e   :  { %166 = vsyncpa [#allocation5], 1 }

// kernel: gpt_forward.16
= control target key start
LH: loop header
LB: loop body
LE: loop exit
PB: predicated region body
PF: predicated region fallthrough
CT: control target
= control target key end

     0   :  { %8 = vsyncpa [#allocation3], 0  ;;  %s319_s0 = inlined_call_operand.hbm [shape: f32[16,32], index: 0, kind: input, shape index: {}]   ;;  %s320_s1 = inlined_call_operand.hbm [shape: f32[1,32], index: 1, kind: input, shape index: {}]   ;;  %s321_s2 = inlined_call_operand.hbm [shape: f32[1,32], index: 2, kind: input, shape index: {}]   ;;  %s322_s3 = inlined_call_operand.hbm [shape: f32[16,32], index: 3, kind: output, shape index: {}]  }
   0x1   :  { %9 = vsyncpa [#allocation6], 0 }
   0x2   :  { %10 = vsyncpa [#allocation4], 0  ;;  %s226_s12 = smov [#allocation5]   ;;  %s227_s14 = smov [#allocation2]  }
   0x3   :  { %s29_s13 = sshll.u32 %s226_s12, 4  ;;  %s16_s15 = sshll.u32 %s227_s14, 4  ;;  %s30_s13 = int_to_ptr.vmem [resolvable:$true] %s29_s13  ;;  %s252_s15 = int_to_ptr.vmem [resolvable:$true] %s16_s15 }
   0x4   :  { %s132_s18 = scalar_lea.hbm %s320_s1, 16 }
   0x5   :  { %p133_p0 = scmp.ne.s32.totalorder %s320_s1, %s132_s18  ;;  %p136_p1 = scmp.lt.u32.totalorder %s132_s18, %s320_s1 }
   0x7   :  { %p138_p2 = pnand %p136_p1, %p133_p0 }
   0x9   :  { %141 = shalt.err (!%p138_p2)
}
   0xa   :  { %s142_s23 = scalar_lea.vmem %s30_s13, 16  ;;  %s146_s24 = scalar_lea.vmem %s30_s13, 32 }
   0xb   :  { %p143_p3 = scmp.ne.s32.totalorder %s30_s13, %s142_s23  ;;  %p147_p4 = scmp.lt.s32.totalorder %s30_s13, %s30_s13 }
   0xc   :  { %p148_p5 = scmp.lt.s32.totalorder %s146_s24, %s142_s23 }
   0xe   :  { %p149_p6 = por %p148_p5, %p147_p4 }
  0x10   :  { %p150_p7 = pnand %p149_p6, %p143_p3 }
  0x12   :  { %153 = shalt.err (!%p150_p7)
}
  0x13   :  { %32 = dma.hbm_to_vmem [thread:$0]  %s320_s1, 16, %s30_s13, [#allocation6]  }
  0x14   :  { %s154_s29 = scalar_lea.hbm %s319_s0, 256 }
  0x15   :  { %p155_p8 = scmp.ne.s32.totalorder %s319_s0, %s154_s29  ;;  %p158_p9 = scmp.lt.u32.totalorder %s154_s29, %s319_s0 }
  0x17   :  { %p160_p10 = pnand %p158_p9, %p155_p8 }
  0x19   :  { %163 = shalt.err (!%p160_p10)
}
  0x1a   :  { %s164_s7 = scalar_lea.vmem %s252_s15, 256  ;;  %p169_p12 = scmp.lt.s32.totalorder %s252_s15, %s252_s15 }
  0x1b   :  { %p165_p11 = scmp.ne.s32.totalorder %s252_s15, %s164_s7  ;;  %p170_p13 = scmp.lt.s32.totalorder %s164_s7, %s164_s7 }
  0x1d   :  { %p171_p0 = por %p170_p13, %p169_p12 }
  0x1f   :  { %p172_p1 = pnand %p171_p0, %p165_p11 }
  0x21   :  { %175 = shalt.err (!%p172_p1)
}
  0x22   :  { %s228_s1 = smov 128   ;;  %s229_s8 = smov 8  }
  0x23   :  { %22 = dma.hbm_to_vmem [thread:$0]  %s319_s0, 256, %s252_s15, [#allocation3], %s228_s1, %s228_s1, %s229_s8  }
  0x24   :  { %s230_s11 = smov [#allocation7]   ;;  %s176_s16 = scalar_lea.hbm %s321_s2, 16 }
  0x25   :  { %s39_s12 = sshll.u32 %s230_s11, 4  ;;  %p177_p2 = scmp.ne.s32.totalorder %s321_s2, %s176_s16  ;;  %s40_s12 = int_to_ptr.vmem [resolvable:$true] %s39_s12 }
  0x26   :  { %p180_p3 = scmp.lt.u32.totalorder %s176_s16, %s321_s2 }
  0x28   :  { %p182_p4 = pnand %p180_p3, %p177_p2 }
  0x2a   :  { %185 = shalt.err (!%p182_p4)
}
  0x2b   :  { %s186_s21 = scalar_lea.vmem %s40_s12, 16  ;;  %s190_s0 = scalar_lea.vmem %s40_s12, 32 }
  0x2c   :  { %p187_p5 = scmp.ne.s32.totalorder %s40_s12, %s186_s21  ;;  %p191_p6 = scmp.lt.s32.totalorder %s40_s12, %s40_s12 }
  0x2d   :  { %p192_p7 = scmp.lt.s32.totalorder %s190_s0, %s186_s21 }
  0x2f   :  { %p193_p8 = por %p192_p7, %p191_p6 }
  0x31   :  { %p194_p9 = pnand %p193_p8, %p187_p5 }
  0x33   :  { %197 = shalt.err (!%p194_p9)
}
  0x34   :  { %42 = dma.hbm_to_vmem [thread:$0]  %s321_s2, 16, %s40_s12, [#allocation6]  }
  0x35   :  { %220 = dma.done.wait [#allocation3], 256  }
  0x36   :  { %221 = vsyncadd [#allocation3], 4294967040 }
  0x37   :  { %222 = dma.done.wait [#allocation6], 32  }
  0x38   :  { %223 = vsyncadd [#allocation6], 4294967264  ;;  %vm54_vm0 = vcmask 261120   ;;  %v52_v0 = vld [vmem:[#allocation2] sm:$0xff]  ;;  %v53_v1 = vld [vmem:[#allocation2 + $0x8] sm:$0xff]  ;;  %s231_s2 = smov [#allocation8]  }
  0x39   :  { %v55_v2 = vsel %vm54_vm0, %v52_v0, 0.0  ;;  %v58_v3 = vsel %vm54_vm0, %v53_v1, 0.0  ;;  %v120_v21 = vld [vmem:[#allocation5] ss:$0 sm:$0xff]  ;;  %v121_v23 = vld [vmem:[#allocation7] ss:$0 sm:$0xff] }
  0x3a   :  { %56 = vadd.xlane.f32.xlu0 %v55_v2  ;;  %s107_s23 = sshll.u32 %s231_s2, 4  ;;  %s108_s23 = int_to_ptr.vmem [resolvable:$true] %s107_s23 }
  0x3b   :  { %s198_s24 = scalar_lea.vmem %s108_s23, 256  ;;  %p203_p11 = scmp.lt.s32.totalorder %s108_s23, %s108_s23 }
  0x3c   :  { %p199_p10 = scmp.ne.s32.totalorder %s108_s23, %s198_s24  ;;  %p204_p12 = scmp.lt.s32.totalorder %s198_s24, %s198_s24 }
  0x3e   :  { %59 = vadd.xlane.f32.xlu0 %v58_v3  ;;  %p205_p13 = por %p204_p12, %p203_p11 }
  0x40   :  { %p206_p0 = pnand %p205_p13, %p199_p10 }
  0xc7   :  { %v57_v4 = vpop.xlane.xlu0 %56 }
  0xc8   :  { %v62_v5 = vmul.f32 0.03125, %v57_v4 }
  0xca   :  { %v64_v6 = vsub.f32 %v52_v0, %v62_v5 }
  0xcb   :  { %v60_v7 = vpop.xlane.xlu0 %59 }
  0xcc   :  { %v63_v8 = vmul.f32 0.03125, %v60_v7  ;;  %v66_v9 = vmul.f32 %v64_v6, %v64_v6 }
  0xce   :  { %v65_v10 = vsub.f32 %v53_v1, %v63_v8  ;;  %v68_v11 = vsel %vm54_vm0, %v66_v9, 0.0 }
  0xcf   :  { %69 = vadd.xlane.f32.xlu1 %v68_v11 }
  0xd0   :  { %v67_v12 = vmul.f32 %v65_v10, %v65_v10 }
  0xd2   :  { %v71_v13 = vsel %vm54_vm0, %v67_v12, 0.0 }
  0xd3   :  { %72 = vadd.xlane.f32.xlu1 %v71_v13 }
 0x15c   :  { %v70_v14 = vpop.xlane.xlu1 %69 }
 0x15d   :  { %v74_v15 = vmul.f32 0.03125, %v70_v14 }
 0x15f   :  { %v76_v16 = vadd.f32 1e-05, %v74_v15 }
 0x160   :  { %v73_v17 = vpop.xlane.xlu1 %72 }
 0x161   :  { %128 = vrsqrt.f32 %v76_v16  ;;  %v75_v18 = vmul.f32 0.03125, %v73_v17 }
 0x163   :  { %v77_v19 = vadd.f32 1e-05, %v75_v18 }
 0x165   :  { %130 = vrsqrt.f32 %v77_v19 }
 0x16b   :  { %v129_v20 = vpop.eup %128 }
 0x16c   :  { %v82_v22 = vmul.f32 %v129_v20, %v64_v6 }
 0x16e   :  { %v90_v24 = vmul.f32 %v120_v21, %v82_v22 }
 0x16f   :  { %v131_v25 = vpop.eup %130 }
 0x170   :  { %v83_v26 = vmul.f32 %v131_v25, %v65_v10  ;;  %v98_v27 = vadd.f32 %v121_v23, %v90_v24 }
 0x172   :  { %v91_v28 = vmul.f32 %v120_v21, %v83_v26  ;;  %100 = vst.msk [vmem:[#allocation8] sm:$0xff] %vm54_vm0, %v98_v27 }
 0x174   :  { %v99_v29 = vadd.f32 %v121_v23, %v91_v28 }
 0x176   :  { %101 = vst.msk [vmem:[#allocation8 + $0x8] sm:$0xff] %vm54_vm0, %v99_v29 }
 0x177   :  { %209 = shalt.err (!%p206_p0)
}
 0x178   :  { %s210_s27 = scalar_lea.hbm %s322_s3, 256 }
 0x179   :  { %p211_p1 = scmp.ne.s32.totalorder %s322_s3, %s210_s27  ;;  %p214_p2 = scmp.lt.u32.totalorder %s210_s27, %s322_s3 }
 0x17b   :  { %p216_p3 = pnand %p214_p2, %p211_p1 }
 0x17d   :  { %219 = shalt.err (!%p216_p3)
}
 0x17e   :  { %113 = dma.vmem_to_hbm [thread:$0]  %s108_s23, 256, %s322_s3, [#allocation4], %s228_s1, %s228_s1, %s229_s8  }
 0x17f   :  { %224 = dma.done.wait [#allocation4], 256  }
 0x180   :  { %225 = vsyncadd [#allocation4], 4294967040 }
 0x181   :  { %117 = vsyncpa [#allocation3], 1 }
 0x182   :  { %118 = vsyncpa [#allocation6], 1 }
 0x183   :  { %119 = vsyncpa [#allocation4], 1 }

// kernel: gpt_forward.18
= control target key start
LH: loop header
LB: loop body
LE: loop exit
PB: predicated region body
PF: predicated region fallthrough
CT: control target
= control target key end

     0   :  { %s1257_s0 = inlined_call_operand.hbm [shape: f32[8,8,8], index: 0, kind: input, shape index: {}]   ;;  %s1258_s1 = inlined_call_operand.hbm [shape: f32[8,8,8], index: 1, kind: input, shape index: {}]   ;;  %s1259_s2 = inlined_call_operand.hbm [shape: f32[8,8,8], index: 2, kind: input, shape index: {}]   ;;  %s1260_s3 = inlined_call_operand.hbm [shape: f32[8,8,8], index: 3, kind: output, shape index: {}]  }
   0x1   :  { %1266 = sst [smem:[#allocation18_spill]] %s1258_s1 }
   0x2   :  { %8 = vsyncpa [#allocation6], 0 }
   0x3   :  { %10 = vsyncpa [#allocation6 + $0x1], 0 }
   0x4   :  { %11 = vsyncpa [#allocation9], 0 }
   0x5   :  { %13 = vsyncpa [#allocation9 + $0x1], 0 }
   0x6   :  { %14 = vsyncpa [#allocation7], 0 }
   0x7   :  { %16 = vsyncpa [#allocation7 + $0x1], 0  ;;  %s983_s12 = smov 0   ;;  %s985_s13 = smov 0  }
   0x8   :  { %s987_s14 = smov 0   ;;  %s989_s15 = smov 0  }
   0x9   :  { %s991_s16 = smov 0   ;;  %s993_s17 = smov 0  }
   0xa LB: > { %1267 = sst [smem:[#allocation15_spill]] %s949_s16  ;;  %s1014_s18 = sadd.s32 4294967295, %s953_s17   ;;  %s953_s17 = sphi %s993_s17, %s22_s17   ;;  %s949_s16 = sphi %s991_s16, %s1287_s16   ;;  %s945_s15 = sphi %s989_s15, %s1286_s15   ;;  %s941_s14 = sphi %s987_s14, %s1290_s14   ;;  %s937_s13 = sphi %s985_s13, %s1289_s13   ;;  %s933_s12 = sphi %s983_s12, %s1288_s12  }
   0xb   : > { %s658_s19 = sadd.s32 4294967294, %s953_s17   ;;  %s41_s20 = sadd.s32 1, %s949_s16 }
   0xc   : > { %s50_s21 = sadd.s32 1, %s941_s14  ;;  %p43_p0 = scmp.ge.s32.totalorder %s41_s20, 8 }
   0xd   : > { %p57_p1 = scmp.ne.s32.totalorder %s941_s14, %s937_s13  ;;  %p58_p2 = scmp.eq.s32.totalorder %s953_s17, 0 }
   0xe   : > { %p63_p3 = scmp.ne.s32.totalorder %s937_s13, %s933_s12  ;;  %s1292_s20 = smov (%p43_p0, %s41_s20), 0 }
   0xf   : > { %1268 = sst [smem:[#allocation16_spill]] %s1292_s20  ;;  %p1026_p4 = por %p58_p2, %p57_p1 }
  0x10   : > { %p64_p5 = scmp.eq.s32.totalorder %s1014_s18, 0  ;;  %s45_s23 = ssub.s32 %s949_s16, %s1292_s20 }
  0x11   : > { %p145_p6 = scmp.eq.s32.totalorder %s1014_s18, 7  ;;  %p48_p7 = scmp.eq.s32.totalorder %s45_s23, 0 }
  0x12   : > { %p1034_p8 = por %p64_p5, %p63_p3  ;;  %p151_p10 = scmp.eq.s32.totalorder %s658_s19, 7 }
  0x13   : > { %p1038_p9 = por %p145_p6, %p57_p1  ;;  %p715_p12 = scmp.lt.s32.totalorder %s953_s17, 8 }
  0x14   : > { %s1270_s24 = scalar_select %p1034_p8, 1, 0 }
  0x15   : > { %s1271_s25 = scalar_select %p1038_p9, 1, 0 }
  0x16   : > { %s1043_s26 = scalar_select %p48_p7, %s941_s14, %s50_s21  }
  0x17   : > { %p1045_p11 = por %p151_p10, %p63_p3  ;;  %s171_s28 = sand.u32 1, %s941_s14  }
  0x18   : > { %1272 = sst [smem:[#allocation17_spill]] %s1043_s26  ;;  %s1053_s29 = sshll.u32 %s171_s28, 3 }
  0x19   : > { %s1273_s27 = scalar_select %p1045_p11, 1, 0 }
  0x1a   : > { %s1056_s30 = sshll.u32 %s949_s16, 7  ;;  %p1060_p13 = pnand %p715_p12, %p1026_p4 }
  0x1b   : > { %s190_s5 = sand.u32 1, %s953_s17   ;;  %s1275_s1 = sld [smem:[#allocation18_spill]] }
  0x1c   : > { %s1274_s4 = scalar_select %p1060_p13, 1, 0 }
  0x1d   : > { %s194_s9 = scalar_lea.vmem [#allocation8], %s1053_s29  ;;  %s1076_s11 = scalar_lea.sflag [#allocation9], %s190_s5 }
  0x1e   : > { %s202_s10 = sshll.u32 %s194_s9, 4  ;;  %p1082_p3 = pneg %p1060_p13  ;;  %s1073_s10 = int_to_ptr.vmem [resolvable:$true] %s202_s10 }
  0x21   : > { %s1069_s8 = scalar_lea.hbm %s1275_s1, %s1056_s30  ;;  %s782_s6 = scalar_lea.hbm %s1275_s1, 1024 }
  0x22   : > { %s777_s19 = scalar_lea.hbm %s1069_s8, 128  ;;  %p783_p6 = scmp.lt.u32.totalorder %s1069_s8, %s1275_s1 }
  0x23   : > { %p778_p2 = scmp.ne.s32.totalorder %s1069_s8, %s777_s19  ;;  %p784_p7 = scmp.lt.u32.totalorder %s782_s6, %s777_s19 }
  0x24   : > { %p786_p12 = scmp.lt.u32.totalorder %s777_s19, %s1069_s8 }
  0x25   : > { %p780_p4 = pnand %p1082_p3, %p778_p2  ;;  %p785_p10 = por %p784_p7, %p783_p6 }
  0x27   : > { %p781_p5 = pneg %p780_p4  ;;  %p787_p0 = por %p786_p12, %p785_p10 }
  0x29   : > { %p788_p1 = pnand %p787_p0, %p781_p5 }
  0x2b   : > { %791 = shalt.err (!%p788_p1)
}
  0x2c   : > { %s792_s5 = scalar_lea.vmem %s1073_s10, 128  ;;  %s955_s22 = smov [#allocation8]  }
  0x2d   : > { %p793_p2 = scmp.ne.s32.totalorder %s1073_s10, %s792_s5  ;;  %s797_s23 = sshll.u32 %s955_s22, 4  ;;  %s798_s23 = int_to_ptr.vmem [resolvable:$false] %s797_s23 }
  0x2e   : > { %s799_s7 = scalar_lea.vmem %s798_s23, 256  ;;  %p800_p9 = scmp.lt.s32.totalorder %s1073_s10, %s798_s23 }
  0x2f   : > { %p795_p4 = pnand %p793_p2, %p1082_p3  ;;  %p801_p8 = scmp.lt.s32.totalorder %s799_s7, %s792_s5 }
  0x31   : > { %p796_p11 = pneg %p795_p4  ;;  %p802_p6 = por %p801_p8, %p800_p9 }
  0x33   : > { %p803_p7 = pnand %p802_p6, %p796_p11 }
  0x35   : > { %806 = shalt.err (!%p803_p7)
}
  0x36   : > { %707 = dma.hbm_to_vmem [thread:$0]  (!%p1060_p13), %s1069_s8, 128, %s1073_s10, %s1076_s11  }
  0x37   : > { %p1277_p0 = scmp.lt.s32.totalorder %s953_s17, 9  ;;  %p1278_p1 = scmp.ge.s32.totalorder %s953_s17, 1 }
  0x38   : > { %s1118_s5 = scalar_lea.hbm %s1257_s0, %s1056_s30  ;;  %s175_s22 = scalar_lea.vmem [#allocation5], %s1053_s29 }
  0x39   : > { %p1110_p5 = pnand %p1278_p1, %p1277_p0  ;;  %s183_s23 = sshll.u32 %s175_s22, 4  ;;  %s1121_s23 = int_to_ptr.vmem [resolvable:$true] %s183_s23 }
  0x3a   : > { %s1127_s7 = scalar_lea.hbm %s1259_s2, %s1056_s30  ;;  %s172_s1 = scalar_lea.sflag [#allocation6], %s171_s28 }
  0x3b   : > { %s1279_s19 = scalar_select %p1110_p5, 1, 0 }
  0x3c   : > { %s807_s20 = scalar_lea.hbm %s1118_s5, 128  ;;  %s812_s16 = scalar_lea.hbm %s1257_s0, 1024 }
  0x3d   : > { %p808_p8 = scmp.ne.s32.totalorder %s1118_s5, %s807_s20  ;;  %p813_p10 = scmp.lt.u32.totalorder %s1118_s5, %s1257_s0 }
  0x3e   : > { %p814_p12 = scmp.lt.u32.totalorder %s812_s16, %s807_s20  ;;  %p816_p4 = scmp.lt.u32.totalorder %s807_s20, %s1118_s5 }
  0x3f   : > { %p810_p9 = pnand %p808_p8, %p1082_p3 }
  0x40   : > { %p815_p2 = por %p814_p12, %p813_p10 }
  0x41   : > { %p811_p11 = pneg %p810_p9 }
  0x42   : > { %p817_p6 = por %p816_p4, %p815_p2 }
  0x44   : > { %p818_p7 = pnand %p817_p6, %p811_p11 }
  0x46   : > { %821 = shalt.err (!%p818_p7)
}
  0x47   : > { %s822_s28 = scalar_lea.vmem %s1121_s23, 128  ;;  %s956_s30 = smov [#allocation5]  }
  0x48   : > { %p823_p0 = scmp.ne.s32.totalorder %s1121_s23, %s822_s28  ;;  %s827_s8 = sshll.u32 %s956_s30, 4  ;;  %s828_s8 = int_to_ptr.vmem [resolvable:$false] %s827_s8 }
  0x49   : > { %s829_s26 = scalar_lea.vmem %s828_s8, 256  ;;  %p830_p9 = scmp.lt.s32.totalorder %s1121_s23, %s828_s8 }
  0x4a   : > { %p825_p1 = pnand %p823_p0, %p1082_p3  ;;  %p831_p5 = scmp.lt.s32.totalorder %s829_s26, %s822_s28 }
  0x4c   : > { %p826_p8 = pneg %p825_p1  ;;  %p832_p10 = por %p831_p5, %p830_p9 }
  0x4e   : > { %p833_p12 = pnand %p832_p10, %p826_p8 }
  0x50   : > { %836 = shalt.err (!%p833_p12)
}
  0x51   : > { %704 = dma.hbm_to_vmem [thread:$0]  (!%p1060_p13), %s1118_s5, 128, %s1121_s23, %s172_s1  }
  0x52   : > { %s213_s16 = scalar_lea.vmem [#allocation10], %s1053_s29  ;;  %s837_s10 = scalar_lea.hbm %s1127_s7, 128 }
  0x53   : > { %s221_s20 = sshll.u32 %s213_s16, 4  ;;  %p838_p11 = scmp.ne.s32.totalorder %s1127_s7, %s837_s10  ;;  %s222_s20 = int_to_ptr.vmem [resolvable:$true] %s221_s20 }
  0x54   : > { %s842_s22 = scalar_lea.hbm %s1259_s2, 1024  ;;  %p843_p4 = scmp.lt.u32.totalorder %s1127_s7, %s1259_s2 }
  0x55   : > { %p840_p5 = pnand %p838_p11, %p1082_p3  ;;  %p844_p6 = scmp.lt.u32.totalorder %s842_s22, %s837_s10 }
  0x56   : > { %p846_p0 = scmp.lt.u32.totalorder %s837_s10, %s1127_s7 }
  0x57   : > { %p841_p2 = pneg %p840_p5  ;;  %p845_p7 = por %p844_p6, %p843_p4 }
  0x59   : > { %p847_p1 = por %p846_p0, %p845_p7 }
  0x5b   : > { %p848_p8 = pnand %p847_p1, %p841_p2 }
  0x5d   : > { %851 = shalt.err (!%p848_p8)
}
  0x5e   : > { %s852_s1 = scalar_lea.vmem %s222_s20, 128  ;;  %s957_s29 = smov [#allocation10]  }
  0x5f   : > { %p853_p9 = scmp.ne.s32.totalorder %s222_s20, %s852_s1  ;;  %s857_s5 = sshll.u32 %s957_s29, 4  ;;  %s858_s5 = int_to_ptr.vmem [resolvable:$false] %s857_s5 }
  0x60   : > { %s859_s23 = scalar_lea.vmem %s858_s5, 256  ;;  %p860_p11 = scmp.lt.s32.totalorder %s222_s20, %s858_s5 }
  0x61   : > { %p855_p10 = pnand %p853_p9, %p1082_p3  ;;  %p861_p5 = scmp.lt.s32.totalorder %s859_s23, %s852_s1 }
  0x63   : > { %p856_p12 = pneg %p855_p10  ;;  %p862_p13 = por %p861_p5, %p860_p11 }
  0x65   : > { %p863_p4 = pnand %p862_p13, %p856_p12 }
  0x67   : > { %866 = shalt.err (!%p863_p4)
}
  0x68   : > { %p1280_p6 = scmp.ne.s32.totalorder %s1274_s4, 0  ;;  %p1281_p2 = scmp.ne.s32.totalorder %s1279_s19, 0 }
  0x69   : > { %s1174_s21 = sand.u32 (!%p1281_p2), 1, %s937_s13   ;;  %p1282_p13 = scmp.ne.s32.totalorder (!%p1281_p2), %s1270_s24, 0 }
  0x6a   : > { %710 = dma.hbm_to_vmem [thread:$0]  (!%p1280_p6), %s1127_s7, 128, %s222_s20, %s1076_s11  }
  0x6b   : > { %230 = sbr.rel (%p1281_p2) target bundleno = 933 (0x3a5), region = 32  ;;  %s1177_s8 = sshll.u32 (!%p1281_p2), %s1174_s21, 3 }
  0x6c   : > { %s233_s26 = scalar_lea.sflag (!%p1281_p2), [#allocation6], %s1174_s21  ;;  %s236_s16 = scalar_lea.vmem (!%p1281_p2), [#allocation5], %s1177_s8 }
  0x72   : > { %920 = dma.done.wait (%p1282_p13), %s233_s26, 128  }
  0x73   : > { %922 = vsyncadd (%p1282_p13), %s233_s26, 4294967168  ;;  %s241_s4 = sand.u32 1, %s1014_s18   ;;  %s245_s19 = scalar_lea.vmem [#allocation8], %s1177_s8 }
  0x74   : > { %s242_s11 = scalar_lea.sflag [#allocation9], %s241_s4 }
  0x75   : > { %924 = dma.done.wait (%p1282_p13), %s242_s11, 256  }
  0x76   : > { %926 = vsyncadd (%p1282_p13), %s242_s11, 4294967040  ;;  %vm294_vm0 = vcmask 64512   ;;  %v958_v0 = vmov 0.0   ;;  %vm959_vm1 = vmmov 0   ;;  %v302_v1 = vld [vmem:[%s245_s19] sm:$0xff]  ;;  %v300_v2 = vld [vmem:[%s236_s16] sm:$0xff]  ;;  %v381_v5 = vlaneseq }
  0x77   : > { %683 = vmatprep.subr.mxu0 %v958_v0  ;;  %295 = vst.msk [vmem:[#allocation4] sm:$0xff] %vm294_vm0, %v958_v0  ;;  %685 = vmatprep.mubr.msk.f32.mxu0 %vm959_vm1, %v958_v0  ;;  %v301_v3 = vmul.f32 0.35355338, %v300_v2  ;;  %vm291_vm2 = vcmask 7168   ;;  %v960_v4 = vmov -1e+30  }
  0x78   : > { %688 = vmatprep.subr.mxu1 %v958_v0  ;;  %690 = vmatprep.mubr.msk.f32.mxu1 %vm959_vm1, %v958_v0  ;;  %292 = vst.msk [vmem:[#allocation2] sm:$0xff] %vm291_vm2, %v960_v4  ;;  %293 = vst.msk [vmem:[#allocation3] sm:$0xff] %vm291_vm2, %v958_v0  ;;  %v382_v6 = vshrl.u32 %v381_v5, 7  ;;  %v387_v7 = vand.u32 127, %v381_v5  ;;  %v961_v12 = vmov 0   ;;  %s254_s18 = scalar_lea.vmem [#allocation10], %s1177_s8 }
  0x79   : > { %684 = vmatpush3.xpose.msk.msra.mxu0 %vm294_vm0, %v302_v1  ;;  %769 = vset.pattern.permute.xlu0 %v961_v12  ;;  %v423_v17 = vld [vmem:[%s254_s18] sm:$0xff]  ;;  %s676_s24 = sshll.u32 %s945_s15, 7  ;;  %s286_s7 = scalar_lea.vmem [#allocation11], %s1177_s8 }
  0x7a   : > { %vm390_vm3 = vcmp.le.s32.totalorder %v387_v7, %v382_v6  ;;  %770 = vset.pattern.permute.xlu1 %v961_v12  ;;  %689 = vmatpush3.msra.mxu1 %v423_v17  ;;  %s529_s20 = sshll.u32 %s286_s7, 4  ;;  %s1208_s9 = scalar_lea.hbm %s1260_s3, %s676_s24  ;;  %s1210_s20 = int_to_ptr.vmem [resolvable:$true] %s529_s20 }
  0x7b   : > { %s515_s22 = scalar_lea.sflag [#allocation7], %s1174_s21  ;;  %s867_s28 = scalar_lea.vmem %s1210_s20, 128 }
  0x7c   : > { %686 = vmatmul.mubr.msk.f32.vlgmr.msra.gmra.mrb[0].mxu0 %vm294_vm0, %v301_v3  ;;  %p868_p3 = scmp.ne.s32.totalorder %s1210_s20, %s867_s28  ;;  %p1283_p7 = scmp.ne.s32.totalorder %s1271_s25, 0 }
  0x7d   : > { %s962_s15 = smov [#allocation11]  }
  0x7e   : > { %v416_v31 = vld [vmem:[#allocation4] sm:$0xff]  ;;  %p869_p0 = pnand %p868_p3, %p1283_p7  ;;  %s871_s30 = sshll.u32 %s962_s15, 4  ;;  %s872_s30 = int_to_ptr.vmem [resolvable:$false] %s871_s30 }
  0x7f   : > { %v392_v13 = vld [vmem:[#allocation2] sm:$0xff]  ;;  %v408_v25 = vld [vmem:[#allocation3] sm:$0xff]  ;;  %s873_s1 = scalar_lea.vmem %s872_s30, 256  ;;  %p874_p8 = scmp.lt.s32.totalorder %s1210_s20, %s872_s30 }
  0x80   : > { %p870_p1 = pneg %p869_p0  ;;  %p875_p9 = scmp.lt.s32.totalorder %s873_s1, %s867_s28 }
  0x82   : > { %p876_p10 = por %p875_p9, %p874_p8 }
  0x84   : > { %p877_p12 = pnand %p876_p10, %p870_p1 }
 0x14f   : > { %v376_v8 = vpop.f32.mrb[0].mxu0 }
 0x150   : > { %v391_v9 = vsel %vm390_vm3, %v376_v8, -1e+30  ;;  %v687_v10 = vpop.f32.mrb[1].mxu0 }
 0x151   : > { %v393_v11 = vsel %vm294_vm0, %v391_v9, -inf }
 0x152   : > { %394 = vmax.xlane.f32.xlu0 %v393_v11 }
 0x1df   : > { %v395_v14 = vpop.xlane.xlu0 %394 }
 0x1e0   : > { %v396_v15 = vmax.f32 %v392_v13, %v395_v14 }
 0x1e2   : > { %v397_v16 = vsub.f32 %v392_v13, %v396_v15  ;;  %499 = vst.msk [vmem:[#allocation2] sm:$0xff] %vm291_vm2, %v396_v15  ;;  %402 = vperm.xlu0 %769, %v396_v15  }
 0x1e4   : > { %v398_v23 = vmul.f32 1.442695, %v397_v16 }
 0x261   : > { %v403_v18 = vpop.permute.xlu0 %402 }
 0x262   : > { %v405_v19 = vsub.f32 %v391_v9, %v403_v18 }
 0x264   : > { %v406_v20 = vmul.f32 1.442695, %v405_v19 }
 0x266   : > { %771 = vpow2.f32 %v406_v20 }
 0x267   : > { %773 = vpow2.f32 %v398_v23 }
 0x270   : > { %v772_v21 = vpop.eup %771 }
 0x271   : > { %691 = vmatmul.mubr.msk.f32.vlgmr.msra.gmra.mrb[0].mxu1 %vm294_vm0, %v772_v21  ;;  %v410_v22 = vsel %vm294_vm0, %v772_v21, 0.0  ;;  %v774_v24 = vpop.eup %773 }
 0x272   : > { %411 = vadd.xlane.f32.xlu1 %v410_v22  ;;  %v409_v26 = vmul.f32 %v774_v24, %v408_v25 }
 0x283   : > { %419 = vperm.xlu1 %770, %v774_v24  }
 0x2ff   : > { %v412_v27 = vpop.xlane.xlu1 %411 }
 0x300   : > { %v413_v28 = vadd.f32 %v412_v27, %v409_v26 }
 0x302   : > { %415 = vst.msk [vmem:[#allocation3] sm:$0xff] %vm291_vm2, %v413_v28 }
 0x303   : > { %v420_v32 = vpop.permute.xlu1 %419 }
 0x304   : > { %v422_v33 = vmul.f32 %v420_v32, %v416_v31 }
 0x309   : > { %v503_v29 = vld [vmem:[#allocation3] sm:$0xff] }
 0x30a   : > { %775 = vrcp.f32 %v503_v29 }
 0x314   : > { %v776_v30 = vpop.eup %775 }
 0x315   : > { %508 = vperm.xlu1 %770, %v776_v30  }
 0x344   : > { %v493_v34 = vpop.f32.mrb[0].mxu1 }
 0x345   : > { %v497_v35 = vadd.f32 %v493_v34, %v422_v33  ;;  %v692_v36 = vpop.f32.mrb[1].mxu1 }
 0x347   : > { %498 = vst.msk [vmem:[#allocation4] sm:$0xff] %vm294_vm0, %v497_v35 }
 0x34e   : > { %v505_v37 = vld [vmem:[#allocation4] sm:$0xff] }
 0x394   : > { %v509_v38 = vpop.permute.xlu1 %508 }
 0x395   : > { %v511_v39 = vmul.f32 %v509_v38, %v505_v37 }
 0x397   : > { %513 = vst.msk [vmem:[%s286_s7] sm:$0xff] %vm294_vm0, %v511_v39 }
 0x398   : > { %880 = shalt.err (!%p877_p12)
}
 0x399   : > { %s881_s29 = scalar_lea.hbm %s1208_s9, 128  ;;  %s885_s21 = scalar_lea.hbm %s1260_s3, 1024 }
 0x39a   : > { %p882_p11 = scmp.ne.s32.totalorder %s1208_s9, %s881_s29  ;;  %p886_p6 = scmp.lt.u32.totalorder %s1208_s9, %s1260_s3 }
 0x39b   : > { %p887_p2 = scmp.lt.u32.totalorder %s885_s21, %s881_s29  ;;  %p889_p3 = scmp.lt.u32.totalorder %s881_s29, %s1208_s9 }
 0x39c   : > { %p883_p5 = pnand %p882_p11, %p1283_p7 }
 0x39d   : > { %p888_p13 = por %p887_p2, %p886_p6 }
 0x39e   : > { %p884_p4 = pneg %p883_p5 }
 0x39f   : > { %p890_p0 = por %p889_p3, %p888_p13 }
 0x3a1   : > { %p891_p1 = pnand %p890_p0, %p884_p4 }
 0x3a3   : > { %894 = shalt.err (!%p891_p1)
}
 0x3a4   : > { %699 = dma.vmem_to_hbm [thread:$0]  (%p1283_p7), %s1210_s20, 128, %s1208_s9, %s515_s22  }
 0x3a5 PF: > { %p716_p8 = scmp.ge.s32.totalorder %s953_s17, 2  ;;  %s541_s16 = sand.u32 1, %s933_s12  }
 0x3a6   : > { %p1284_p9 = scmp.ne.s32.totalorder %s1273_s27, 0  ;;  %s542_s4 = scalar_lea.sflag [#allocation7], %s541_s16 }
 0x3a8   : > { %p712_p10 = pnand %p716_p8, %p1284_p9 }
 0x3aa   : > { %928 = dma.done.wait (!%p712_p10), %s542_s4, 128  }
 0x3ab   : > { %930 = vsyncadd (!%p712_p10), %s542_s4, 4294967168  ;;  %s22_s17 = sadd.s32 1, %s953_s17   ;;  %s1285_s25 = sld [smem:[#allocation17_spill]] }
 0x3ac   : > { %p19_p12 = scmp.ge.s32.totalorder %s22_s17, 10   ;;  %s1286_s15 = sld [smem:[#allocation15_spill]] }
 0x3ad   : > { %s1287_s16 = sld [smem:[#allocation16_spill]]  ;;  %s1288_s12 = smov %s937_s13 }
 0x3ae   : > { %s1289_s13 = smov %s941_s14  ;;  %21 = sbr.rel (!%p19_p12) target bundleno = 10 (0xa), region = 113 }
 0x3b1   : > { %s1290_s14 = smov %s1285_s25 }
 0x3b5   :  { %547 = vsyncpa [#allocation6], 1 }
 0x3b6   :  { %549 = vsyncpa [#allocation6 + $0x1], 1 }
 0x3b7   :  { %550 = vsyncpa [#allocation9], 1 }
 0x3b8   :  { %552 = vsyncpa [#allocation9 + $0x1], 1 }
 0x3b9   :  { %553 = vsyncpa [#allocation7], 1 }
 0x3ba   :  { %555 = vsyncpa [#allocation7 + $0x1], 1 }

// kernel: gpt_forward.19
= control target key start
LH: loop header
LB: loop body
LE: loop exit
PB: predicated region body
PF: predicated region fallthrough
CT: control target
= control target key end

     0   :  { %9 = vsyncpa [#allocation4], 0  ;;  %s492_s0 = inlined_call_operand.hbm [shape: f32[16,32], index: 0, kind: input, shape index: {}]   ;;  %s493_s1 = inlined_call_operand.hbm [shape: f32[32,32], index: 1, kind: input, shape index: {}]   ;;  %s494_s2 = inlined_call_operand.hbm [shape: f32[1,32], index: 2, kind: input, shape index: {}]   ;;  %s495_s3 = inlined_call_operand.hbm [shape: f32[16,32], index: 3, kind: input, shape index: {}]   ;;  %s496_s4 = inlined_call_operand.hbm [shape: f32[16,32], index: 4, kind: output, shape index: {}]  }
   0x1   :  { %10 = vsyncpa [#allocation7], 0 }
   0x2   :  { %11 = vsyncpa [#allocation10], 0 }
   0x3   :  { %12 = vsyncpa [#allocation5], 0  ;;  %s365_s15 = smov [#allocation6]   ;;  %s366_s17 = smov [#allocation3]  }
   0x4   :  { %s30_s16 = sshll.u32 %s365_s15, 4  ;;  %s18_s18 = sshll.u32 %s366_s17, 4  ;;  %s31_s16 = int_to_ptr.vmem [resolvable:$true] %s30_s16  ;;  %s398_s18 = int_to_ptr.vmem [resolvable:$true] %s18_s18 }
   0x5   :  { %s247_s21 = scalar_lea.hbm %s493_s1, 512 }
   0x6   :  { %p248_p0 = scmp.ne.s32.totalorder %s493_s1, %s247_s21  ;;  %p251_p1 = scmp.lt.u32.totalorder %s247_s21, %s493_s1 }
   0x8   :  { %p253_p2 = pnand %p251_p1, %p248_p0 }
   0xa   :  { %256 = shalt.err (!%p253_p2)
}
   0xb   :  { %s257_s26 = scalar_lea.vmem %s31_s16, 512  ;;  %p262_p4 = scmp.lt.s32.totalorder %s31_s16, %s31_s16 }
   0xc   :  { %p258_p3 = scmp.ne.s32.totalorder %s31_s16, %s257_s26  ;;  %p263_p5 = scmp.lt.s32.totalorder %s257_s26, %s257_s26 }
   0xe   :  { %p264_p6 = por %p263_p5, %p262_p4 }
  0x10   :  { %p265_p7 = pnand %p264_p6, %p258_p3 }
  0x12   :  { %268 = shalt.err (!%p265_p7)
}
  0x13   :  { %s367_s27 = smov 128   ;;  %s368_s28 = smov 8  }
  0x14   :  { %36 = dma.hbm_to_vmem [thread:$0]  %s493_s1, 512, %s31_s16, [#allocation7], %s367_s27, %s367_s27, %s368_s28  }
  0x15   :  { %s269_s7 = scalar_lea.hbm %s492_s0, 256 }
  0x16   :  { %p270_p8 = scmp.ne.s32.totalorder %s492_s0, %s269_s7  ;;  %p273_p9 = scmp.lt.u32.totalorder %s269_s7, %s492_s0 }
  0x18   :  { %p275_p10 = pnand %p273_p9, %p270_p8 }
  0x1a   :  { %278 = shalt.err (!%p275_p10)
}
  0x1b   :  { %s279_s12 = scalar_lea.vmem %s398_s18, 256  ;;  %p284_p12 = scmp.lt.s32.totalorder %s398_s18, %s398_s18 }
  0x1c   :  { %p280_p11 = scmp.ne.s32.totalorder %s398_s18, %s279_s12  ;;  %p285_p13 = scmp.lt.s32.totalorder %s279_s12, %s279_s12 }
  0x1e   :  { %p286_p0 = por %p285_p13, %p284_p12 }
  0x20   :  { %p287_p1 = pnand %p286_p0, %p280_p11 }
  0x22   :  { %290 = shalt.err (!%p287_p1)
}
  0x23   :  { %24 = dma.hbm_to_vmem [thread:$0]  %s492_s0, 256, %s398_s18, [#allocation4], %s367_s27, %s367_s27, %s368_s28  }
  0x24   :  { %s369_s14 = smov [#allocation8]   ;;  %s370_s16 = smov [#allocation9]  }
  0x25   :  { %s43_s15 = sshll.u32 %s369_s14, 4  ;;  %s52_s17 = sshll.u32 %s370_s16, 4  ;;  %s44_s15 = int_to_ptr.vmem [resolvable:$true] %s43_s15  ;;  %s435_s17 = int_to_ptr.vmem [resolvable:$true] %s52_s17 }
  0x26   :  { %s291_s21 = scalar_lea.hbm %s494_s2, 16 }
  0x27   :  { %p292_p2 = scmp.ne.s32.totalorder %s494_s2, %s291_s21  ;;  %p295_p3 = scmp.lt.u32.totalorder %s291_s21, %s494_s2 }
  0x29   :  { %p297_p4 = pnand %p295_p3, %p292_p2 }
  0x2b   :  { %300 = shalt.err (!%p297_p4)
}
  0x2c   :  { %s301_s0 = scalar_lea.vmem %s44_s15, 16  ;;  %s305_s18 = scalar_lea.vmem %s44_s15, 32 }
  0x2d   :  { %p302_p5 = scmp.ne.s32.totalorder %s44_s15, %s301_s0  ;;  %p306_p6 = scmp.lt.s32.totalorder %s44_s15, %s44_s15 }
  0x2e   :  { %p307_p7 = scmp.lt.s32.totalorder %s305_s18, %s301_s0 }
  0x30   :  { %p308_p8 = por %p307_p7, %p306_p6 }
  0x32   :  { %p309_p9 = pnand %p308_p8, %p302_p5 }
  0x34   :  { %312 = shalt.err (!%p309_p9)
}
  0x35   :  { %46 = dma.hbm_to_vmem [thread:$0]  %s494_s2, 16, %s44_s15, [#allocation7]  }
  0x36   :  { %s313_s6 = scalar_lea.hbm %s495_s3, 256 }
  0x37   :  { %p314_p10 = scmp.ne.s32.totalorder %s495_s3, %s313_s6  ;;  %p317_p11 = scmp.lt.u32.totalorder %s313_s6, %s495_s3 }
  0x39   :  { %p319_p12 = pnand %p317_p11, %p314_p10 }
  0x3b   :  { %322 = shalt.err (!%p319_p12)
}
  0x3c   :  { %s323_s11 = scalar_lea.vmem %s435_s17, 256  ;;  %p328_p0 = scmp.lt.s32.totalorder %s435_s17, %s435_s17 }
  0x3d   :  { %p324_p13 = scmp.ne.s32.totalorder %s435_s17, %s323_s11  ;;  %p329_p1 = scmp.lt.s32.totalorder %s323_s11, %s323_s11 }
  0x3f   :  { %p330_p2 = por %p329_p1, %p328_p0 }
  0x41   :  { %p331_p3 = pnand %p330_p2, %p324_p13 }
  0x43   :  { %334 = shalt.err (!%p331_p3)
}
  0x44   :  { %58 = dma.hbm_to_vmem [thread:$0]  %s495_s3, 256, %s435_s17, [#allocation10], %s367_s27, %s367_s27, %s368_s28  }
  0x45   :  { %357 = dma.done.wait [#allocation4], 256  }
  0x46   :  { %358 = vsyncadd [#allocation4], 4294967040 }
  0x47   :  { %359 = dma.done.wait [#allocation7], 528  }
  0x48   :  { %360 = vsyncadd [#allocation7], 4294966768 }
  0x49   :  { %361 = dma.done.wait [#allocation10], 256  }
  0x4a   :  { %362 = vsyncadd [#allocation10], 4294967040  ;;  %vm75_vm0 = vcmask 261120   ;;  %v371_v0 = vmov 0.0   ;;  %v82_v1 = vld [vmem:[#allocation6] sm:$0xff]  ;;  %v83_v2 = vld [vmem:[#allocation6 + $0x8] sm:$0xff] }
  0x4b   :  { %77 = vst.msk [vmem:[#allocation2 + $0x8] sm:$0xff] %vm75_vm0, %v371_v0  ;;  %76 = vst.msk [vmem:[#allocation2] sm:$0xff] %vm75_vm0, %v371_v0  ;;  %v84_v3 = vld [vmem:[#allocation6 + $0x10] sm:$0xff]  ;;  %v231_v4 = vpack.c.bf16 %v83_v2, %v82_v1  ;;  %v85_v5 = vld [vmem:[#allocation6 + $0x18] sm:$0xff]  ;;  %s372_s3 = smov [#allocation11]  }
  0x4c   :  { %v80_v6 = vld [vmem:[#allocation3] sm:$0xff]  ;;  %v235_v7 = vpack.c.bf16 %v85_v5, %v84_v3  ;;  %v81_v8 = vld [vmem:[#allocation3 + $0x8] sm:$0xff]  ;;  %v213_v15 = vld [vmem:[#allocation8] ss:$0 sm:$0xff]  ;;  %s197_s1 = sshll.u32 %s372_s3, 4  ;;  %s198_s1 = int_to_ptr.vmem [resolvable:$true] %s197_s1 }
  0x4d   :  { %228 = vmatprep.mubr.msk.f32.mxu0 %vm75_vm0, %v80_v6  ;;  %232 = vmatprep.subr.bf16.mxu0 %v231_v4  ;;  %v187_v17 = vld [vmem:[#allocation9 + $0x8] sm:$0xff]  ;;  %v186_v20 = vld [vmem:[#allocation9] sm:$0xff]  ;;  %s335_s13 = scalar_lea.vmem %s198_s1, 256  ;;  %p340_p5 = scmp.lt.s32.totalorder %s198_s1, %s198_s1 }
  0x4e   :  { %234 = vmatpush3.bf16.msra.mxu0 %v231_v4  ;;  %p336_p4 = scmp.ne.s32.totalorder %s198_s1, %s335_s13  ;;  %p341_p6 = scmp.lt.s32.totalorder %s335_s13, %s335_s13 }
  0x4f   :  { %236 = vmatprep.subr.bf16.mxu0 %v235_v7 }
  0x50   :  { %p342_p7 = por %p341_p6, %p340_p5 }
  0x52   :  { %238 = vmatpush3.bf16.msra.mxu0 %v235_v7  ;;  %v79_v9 = vld [vmem:[#allocation2 + $0x8] sm:$0xff]  ;;  %v78_v10 = vld [vmem:[#allocation2] sm:$0xff]  ;;  %p343_p8 = pnand %p342_p7, %p336_p4 }
  0x55   :  { %229 = vmatmul.mubr.msk.f32.vlgmr.msra.gmra.mrb[0].mxu0 %vm75_vm0, %v81_v8 }
 0x128   :  { %v230_v11 = vpop.f32.mrb[0].mxu0 }
 0x129   :  { %v169_v12 = vadd.f32 %v230_v11, %v79_v9  ;;  %v159_v13 = vpop.f32.mrb[1].mxu0 }
 0x12a   :  { %v168_v14 = vadd.f32 %v159_v13, %v78_v10 }
 0x12b   :  { %171 = vst.msk [vmem:[#allocation2 + $0x8] sm:$0xff] %vm75_vm0, %v169_v12 }
 0x12c   :  { %170 = vst.msk [vmem:[#allocation2] sm:$0xff] %vm75_vm0, %v168_v14 }
 0x132   :  { %v176_v16 = vld [vmem:[#allocation2 + $0x8] sm:$0xff] }
 0x133   :  { %v175_v18 = vld [vmem:[#allocation2] sm:$0xff]  ;;  %v185_v19 = vadd.f32 %v213_v15, %v176_v16 }
 0x134   :  { %v184_v21 = vadd.f32 %v213_v15, %v175_v18 }
 0x135   :  { %v189_v22 = vadd.f32 %v187_v17, %v185_v19 }
 0x136   :  { %v188_v23 = vadd.f32 %v186_v20, %v184_v21 }
 0x137   :  { %191 = vst.msk [vmem:[#allocation11 + $0x8] sm:$0xff] %vm75_vm0, %v189_v22 }
 0x138   :  { %190 = vst.msk [vmem:[#allocation11] sm:$0xff] %vm75_vm0, %v188_v23 }
 0x139   :  { %346 = shalt.err (!%p343_p8)
}
 0x13a   :  { %s347_s16 = scalar_lea.hbm %s496_s4, 256 }
 0x13b   :  { %p348_p9 = scmp.ne.s32.totalorder %s496_s4, %s347_s16  ;;  %p351_p10 = scmp.lt.u32.totalorder %s347_s16, %s496_s4 }
 0x13d   :  { %p353_p11 = pnand %p351_p10, %p348_p9 }
 0x13f   :  { %356 = shalt.err (!%p353_p11)
}
 0x140   :  { %203 = dma.vmem_to_hbm [thread:$0]  %s198_s1, 256, %s496_s4, [#allocation5], %s367_s27, %s367_s27, %s368_s28  }
 0x141   :  { %363 = dma.done.wait [#allocation5], 256  }
 0x142   :  { %364 = vsyncadd [#allocation5], 4294967040 }
 0x143   :  { %207 = vsyncpa [#allocation4], 1 }
 0x144   :  { %208 = vsyncpa [#allocation7], 1 }
 0x145   :  { %209 = vsyncpa [#allocation10], 1 }
 0x146   :  { %210 = vsyncpa [#allocation5], 1 }

// kernel: gpt_forward.21
= control target key start
LH: loop header
LB: loop body
LE: loop exit
PB: predicated region body
PF: predicated region fallthrough
CT: control target
= control target key end

     0   :  { %8 = vsyncpa [#allocation4], 0  ;;  %s428_s0 = inlined_call_operand.hbm [shape: f32[16,32], index: 0, kind: input, shape index: {}]   ;;  %s429_s1 = inlined_call_operand.hbm [shape: f32[32,128], index: 1, kind: input, shape index: {}]   ;;  %s430_s2 = inlined_call_operand.hbm [shape: f32[1,128], index: 2, kind: input, shape index: {}]   ;;  %s431_s3 = inlined_call_operand.hbm [shape: f32[16,128], index: 3, kind: output, shape index: {}]  }
   0x1   :  { %9 = vsyncpa [#allocation7], 0 }
   0x2   :  { %10 = vsyncpa [#allocation5], 0  ;;  %s338_s12 = smov [#allocation6]   ;;  %s339_s14 = smov [#allocation3]  }
   0x3   :  { %s28_s13 = sshll.u32 %s338_s12, 4  ;;  %s16_s15 = sshll.u32 %s339_s14, 4  ;;  %s29_s13 = int_to_ptr.vmem [resolvable:$true] %s28_s13  ;;  %s364_s15 = int_to_ptr.vmem [resolvable:$true] %s16_s15 }
   0x4   :  { %s244_s18 = scalar_lea.hbm %s429_s1, 512 }
   0x5   :  { %p245_p0 = scmp.ne.s32.totalorder %s429_s1, %s244_s18  ;;  %p248_p1 = scmp.lt.u32.totalorder %s244_s18, %s429_s1 }
   0x7   :  { %p250_p2 = pnand %p248_p1, %p245_p0 }
   0x9   :  { %253 = shalt.err (!%p250_p2)
}
   0xa   :  { %s254_s23 = scalar_lea.vmem %s29_s13, 512  ;;  %p259_p4 = scmp.lt.s32.totalorder %s29_s13, %s29_s13 }
   0xb   :  { %p255_p3 = scmp.ne.s32.totalorder %s29_s13, %s254_s23  ;;  %p260_p5 = scmp.lt.s32.totalorder %s254_s23, %s254_s23 }
   0xd   :  { %p261_p6 = por %p260_p5, %p259_p4 }
   0xf   :  { %p262_p7 = pnand %p261_p6, %p255_p3 }
  0x11   :  { %265 = shalt.err (!%p262_p7)
}
  0x12   :  { %s340_s24 = smov 128   ;;  %s341_s25 = smov 8  }
  0x13   :  { %34 = dma.hbm_to_vmem [thread:$0]  %s429_s1, 512, %s29_s13, [#allocation7], %s340_s24, %s340_s24, %s341_s25  }
  0x14   :  { %s266_s30 = scalar_lea.hbm %s428_s0, 256 }
  0x15   :  { %p267_p8 = scmp.ne.s32.totalorder %s428_s0, %s266_s30  ;;  %p270_p9 = scmp.lt.u32.totalorder %s266_s30, %s428_s0 }
  0x17   :  { %p272_p10 = pnand %p270_p9, %p267_p8 }
  0x19   :  { %275 = shalt.err (!%p272_p10)
}
  0x1a   :  { %s276_s8 = scalar_lea.vmem %s364_s15, 256  ;;  %p281_p12 = scmp.lt.s32.totalorder %s364_s15, %s364_s15 }
  0x1b   :  { %p277_p11 = scmp.ne.s32.totalorder %s364_s15, %s276_s8  ;;  %p282_p13 = scmp.lt.s32.totalorder %s276_s8, %s276_s8 }
  0x1d   :  { %p283_p0 = por %p282_p13, %p281_p12 }
  0x1f   :  { %p284_p1 = pnand %p283_p0, %p277_p11 }
  0x21   :  { %287 = shalt.err (!%p284_p1)
}
  0x22   :  { %22 = dma.hbm_to_vmem [thread:$0]  %s428_s0, 256, %s364_s15, [#allocation4], %s340_s24, %s340_s24, %s341_s25  }
  0x23   :  { %s342_s10 = smov [#allocation8]   ;;  %s288_s14 = scalar_lea.hbm %s430_s2, 16 }
  0x24   :  { %s41_s11 = sshll.u32 %s342_s10, 4  ;;  %p289_p2 = scmp.ne.s32.totalorder %s430_s2, %s288_s14  ;;  %s42_s11 = int_to_ptr.vmem [resolvable:$true] %s41_s11 }
  0x25   :  { %p292_p3 = scmp.lt.u32.totalorder %s288_s14, %s430_s2 }
  0x27   :  { %p294_p4 = pnand %p292_p3, %p289_p2 }
  0x29   :  { %297 = shalt.err (!%p294_p4)
}
  0x2a   :  { %s298_s20 = scalar_lea.vmem %s42_s11, 16  ;;  %s302_s0 = scalar_lea.vmem %s42_s11, 32 }
  0x2b   :  { %p299_p5 = scmp.ne.s32.totalorder %s42_s11, %s298_s20  ;;  %p303_p6 = scmp.lt.s32.totalorder %s42_s11, %s42_s11 }
  0x2c   :  { %p304_p7 = scmp.lt.s32.totalorder %s302_s0, %s298_s20 }
  0x2e   :  { %p305_p8 = por %p304_p7, %p303_p6 }
  0x30   :  { %p306_p9 = pnand %p305_p8, %p299_p5 }
  0x32   :  { %309 = shalt.err (!%p306_p9)
}
  0x33   :  { %44 = dma.hbm_to_vmem [thread:$0]  %s430_s2, 16, %s42_s11, [#allocation7]  }
  0x34   :  { %332 = dma.done.wait [#allocation4], 256  }
  0x35   :  { %333 = vsyncadd [#allocation4], 4294967040 }
  0x36   :  { %334 = dma.done.wait [#allocation7], 528  }
  0x37   :  { %335 = vsyncadd [#allocation7], 4294966768  ;;  %vm68_vm0 = vcmask 261120   ;;  %v64_v0 = vld [vmem:[#allocation6] sm:$0xff]  ;;  %v65_v1 = vld [vmem:[#allocation6 + $0x8] sm:$0xff]  ;;  %s343_s2 = smov [#allocation9]  }
  0x38   :  { %v66_v2 = vld [vmem:[#allocation6 + $0x10] sm:$0xff]  ;;  %v226_v3 = vpack.c.bf16 %v65_v1, %v64_v0  ;;  %v67_v4 = vld [vmem:[#allocation6 + $0x18] sm:$0xff]  ;;  %v208_v8 = vld [vmem:[#allocation8] ss:$0 sm:$0xff]  ;;  %s193_s22 = sshll.u32 %s343_s2, 4  ;;  %s194_s22 = int_to_ptr.vmem [resolvable:$true] %s193_s22 }
  0x39   :  { %v62_v5 = vld [vmem:[#allocation3] sm:$0xff]  ;;  %v230_v6 = vpack.c.bf16 %v67_v4, %v66_v2  ;;  %v63_v7 = vld [vmem:[#allocation3 + $0x8] sm:$0xff]  ;;  %s310_s23 = scalar_lea.vmem %s194_s22, 256  ;;  %p315_p11 = scmp.lt.s32.totalorder %s194_s22, %s194_s22 }
  0x3a   :  { %223 = vmatprep.mubr.msk.f32.mxu0 %vm68_vm0, %v62_v5  ;;  %227 = vmatprep.subr.bf16.mxu0 %v226_v3  ;;  %p311_p10 = scmp.ne.s32.totalorder %s194_s22, %s310_s23  ;;  %p316_p12 = scmp.lt.s32.totalorder %s310_s23, %s310_s23 }
  0x3b   :  { %229 = vmatpush3.bf16.msra.mxu0 %v226_v3 }
  0x3c   :  { %231 = vmatprep.subr.bf16.mxu0 %v230_v6  ;;  %p317_p13 = por %p316_p12, %p315_p11 }
  0x3e   :  { %p318_p0 = pnand %p317_p13, %p311_p10 }
  0x3f   :  { %233 = vmatpush3.bf16.msra.mxu0 %v230_v6 }
  0x42   :  { %224 = vmatmul.mubr.msk.f32.vlgmr.msra.gmra.mrb[0].mxu0 %vm68_vm0, %v63_v7 }
 0x115   :  { %v225_v9 = vpop.f32.mrb[0].mxu0 }
 0x116   :  { %v167_v10 = vadd.f32 %v225_v9, %v208_v8  ;;  %v141_v11 = vpop.f32.mrb[1].mxu0 }
 0x117   :  { %v166_v12 = vadd.f32 %v208_v8, %v141_v11 }
 0x118   :  { %v171_v13 = vmul.f32 0.044715, %v167_v10  ;;  %v169_v25 = vmul.f32 0.5, %v167_v10 }
 0x119   :  { %v170_v14 = vmul.f32 0.044715, %v166_v12  ;;  %v168_v27 = vmul.f32 0.5, %v166_v12 }
 0x11a   :  { %v173_v15 = vmul.f32 %v171_v13, %v167_v10 }
 0x11b   :  { %v172_v16 = vmul.f32 %v170_v14, %v166_v12 }
 0x11c   :  { %v175_v17 = vmul.f32 %v173_v15, %v167_v10 }
 0x11d   :  { %v174_v18 = vmul.f32 %v172_v16, %v166_v12 }
 0x11e   :  { %v177_v19 = vadd.f32 %v175_v17, %v167_v10 }
 0x11f   :  { %v176_v20 = vadd.f32 %v174_v18, %v166_v12 }
 0x120   :  { %v179_v21 = vmul.f32 0.7978846, %v177_v19 }
 0x121   :  { %v178_v22 = vmul.f32 0.7978846, %v176_v20 }
 0x122   :  { %240 = vtanh.f32 %v179_v21 }
 0x123   :  { %242 = vtanh.f32 %v178_v22 }
 0x12c   :  { %v241_v23 = vpop.eup %240 }
 0x12d   :  { %v243_v24 = vpop.eup %242  ;;  %v183_v26 = vadd.f32 1.0, %v241_v23 }
 0x12e   :  { %v182_v28 = vadd.f32 1.0, %v243_v24 }
 0x12f   :  { %v185_v29 = vmul.f32 %v183_v26, %v169_v25 }
 0x130   :  { %v184_v30 = vmul.f32 %v182_v28, %v168_v27 }
 0x131   :  { %187 = vst [vmem:[#allocation9 + $0x8] sm:$0xff] %v185_v29 }
 0x132   :  { %186 = vst [vmem:[#allocation9] sm:$0xff] %v184_v30 }
 0x133   :  { %321 = shalt.err (!%p318_p0)
}
 0x134   :  { %s322_s28 = scalar_lea.hbm %s431_s3, 256 }
 0x135   :  { %p323_p1 = scmp.ne.s32.totalorder %s431_s3, %s322_s28  ;;  %p326_p2 = scmp.lt.u32.totalorder %s322_s28, %s431_s3 }
 0x137   :  { %p328_p3 = pnand %p326_p2, %p323_p1 }
 0x139   :  { %331 = shalt.err (!%p328_p3)
}
 0x13a   :  { %199 = dma.vmem_to_hbm [thread:$0]  %s194_s22, 256, %s431_s3, [#allocation5], %s340_s24, %s340_s24, %s341_s25  }
 0x13b   :  { %336 = dma.done.wait [#allocation5], 256  }
 0x13c   :  { %337 = vsyncadd [#allocation5], 4294967040 }
 0x13d   :  { %203 = vsyncpa [#allocation4], 1 }
 0x13e   :  { %204 = vsyncpa [#allocation7], 1 }
 0x13f   :  { %205 = vsyncpa [#allocation5], 1 }

// kernel: gpt_forward.22
= control target key start
LH: loop header
LB: loop body
LE: loop exit
PB: predicated region body
PF: predicated region fallthrough
CT: control target
= control target key end

     0   :  { %9 = vsyncpa [#allocation4], 0  ;;  %s554_s0 = inlined_call_operand.hbm [shape: f32[16,128], index: 0, kind: input, shape index: {}]   ;;  %s555_s1 = inlined_call_operand.hbm [shape: f32[128,32], index: 1, kind: input, shape index: {}]   ;;  %s556_s2 = inlined_call_operand.hbm [shape: f32[1,32], index: 2, kind: input, shape index: {}]   ;;  %s557_s3 = inlined_call_operand.hbm [shape: f32[16,32], index: 3, kind: input, shape index: {}]   ;;  %s558_s4 = inlined_call_operand.hbm [shape: f32[16,32], index: 4, kind: output, shape index: {}]  }
   0x1   :  { %10 = vsyncpa [#allocation7], 0 }
   0x2   :  { %11 = vsyncpa [#allocation10], 0 }
   0x3   :  { %12 = vsyncpa [#allocation5], 0  ;;  %s429_s15 = smov [#allocation6]   ;;  %s430_s17 = smov [#allocation3]  }
   0x4   :  { %s30_s16 = sshll.u32 %s429_s15, 4  ;;  %s18_s18 = sshll.u32 %s430_s17, 4  ;;  %s31_s16 = int_to_ptr.vmem [resolvable:$true] %s30_s16  ;;  %s462_s18 = int_to_ptr.vmem [resolvable:$true] %s18_s18 }
   0x5   :  { %s311_s21 = scalar_lea.hbm %s555_s1, 2048 }
   0x6   :  { %p312_p0 = scmp.ne.s32.totalorder %s555_s1, %s311_s21  ;;  %p315_p1 = scmp.lt.u32.totalorder %s311_s21, %s555_s1 }
   0x8   :  { %p317_p2 = pnand %p315_p1, %p312_p0 }
   0xa   :  { %320 = shalt.err (!%p317_p2)
}
   0xb   :  { %s321_s26 = scalar_lea.vmem %s31_s16, 2048  ;;  %p326_p4 = scmp.lt.s32.totalorder %s31_s16, %s31_s16 }
   0xc   :  { %p322_p3 = scmp.ne.s32.totalorder %s31_s16, %s321_s26  ;;  %p327_p5 = scmp.lt.s32.totalorder %s321_s26, %s321_s26 }
   0xe   :  { %p328_p6 = por %p327_p5, %p326_p4 }
  0x10   :  { %p329_p7 = pnand %p328_p6, %p322_p3 }
  0x12   :  { %332 = shalt.err (!%p329_p7)
}
  0x13   :  { %s431_s27 = smov 128   ;;  %s432_s28 = smov 8  }
  0x14   :  { %36 = dma.hbm_to_vmem [thread:$0]  %s555_s1, 2048, %s31_s16, [#allocation7], %s431_s27, %s431_s27, %s432_s28  }
  0x15   :  { %s333_s7 = scalar_lea.hbm %s554_s0, 256 }
  0x16   :  { %p334_p8 = scmp.ne.s32.totalorder %s554_s0, %s333_s7  ;;  %p337_p9 = scmp.lt.u32.totalorder %s333_s7, %s554_s0 }
  0x18   :  { %p339_p10 = pnand %p337_p9, %p334_p8 }
  0x1a   :  { %342 = shalt.err (!%p339_p10)
}
  0x1b   :  { %s343_s12 = scalar_lea.vmem %s462_s18, 256  ;;  %p348_p12 = scmp.lt.s32.totalorder %s462_s18, %s462_s18 }
  0x1c   :  { %p344_p11 = scmp.ne.s32.totalorder %s462_s18, %s343_s12  ;;  %p349_p13 = scmp.lt.s32.totalorder %s343_s12, %s343_s12 }
  0x1e   :  { %p350_p0 = por %p349_p13, %p348_p12 }
  0x20   :  { %p351_p1 = pnand %p350_p0, %p344_p11 }
  0x22   :  { %354 = shalt.err (!%p351_p1)
}
  0x23   :  { %24 = dma.hbm_to_vmem [thread:$0]  %s554_s0, 256, %s462_s18, [#allocation4], %s431_s27, %s431_s27, %s432_s28  }
  0x24   :  { %s433_s14 = smov [#allocation8]   ;;  %s434_s16 = smov [#allocation9]  }
  0x25   :  { %s43_s15 = sshll.u32 %s433_s14, 4  ;;  %s52_s17 = sshll.u32 %s434_s16, 4  ;;  %s44_s15 = int_to_ptr.vmem [resolvable:$true] %s43_s15  ;;  %s499_s17 = int_to_ptr.vmem [resolvable:$true] %s52_s17 }
  0x26   :  { %s355_s21 = scalar_lea.hbm %s556_s2, 16 }
  0x27   :  { %p356_p2 = scmp.ne.s32.totalorder %s556_s2, %s355_s21  ;;  %p359_p3 = scmp.lt.u32.totalorder %s355_s21, %s556_s2 }
  0x29   :  { %p361_p4 = pnand %p359_p3, %p356_p2 }
  0x2b   :  { %364 = shalt.err (!%p361_p4)
}
  0x2c   :  { %s365_s0 = scalar_lea.vmem %s44_s15, 16  ;;  %s369_s18 = scalar_lea.vmem %s44_s15, 32 }
  0x2d   :  { %p366_p5 = scmp.ne.s32.totalorder %s44_s15, %s365_s0  ;;  %p370_p6 = scmp.lt.s32.totalorder %s44_s15, %s44_s15 }
  0x2e   :  { %p371_p7 = scmp.lt.s32.totalorder %s369_s18, %s365_s0 }
  0x30   :  { %p372_p8 = por %p371_p7, %p370_p6 }
  0x32   :  { %p373_p9 = pnand %p372_p8, %p366_p5 }
  0x34   :  { %376 = shalt.err (!%p373_p9)
}
  0x35   :  { %46 = dma.hbm_to_vmem [thread:$0]  %s556_s2, 16, %s44_s15, [#allocation7]  }
  0x36   :  { %s377_s6 = scalar_lea.hbm %s557_s3, 256 }
  0x37   :  { %p378_p10 = scmp.ne.s32.totalorder %s557_s3, %s377_s6  ;;  %p381_p11 = scmp.lt.u32.totalorder %s377_s6, %s557_s3 }
  0x39   :  { %p383_p12 = pnand %p381_p11, %p378_p10 }
  0x3b   :  { %386 = shalt.err (!%p383_p12)
}
  0x3c   :  { %s387_s11 = scalar_lea.vmem %s499_s17, 256  ;;  %p392_p0 = scmp.lt.s32.totalorder %s499_s17, %s499_s17 }
  0x3d   :  { %p388_p13 = scmp.ne.s32.totalorder %s499_s17, %s387_s11  ;;  %p393_p1 = scmp.lt.s32.totalorder %s387_s11, %s387_s11 }
  0x3f   :  { %p394_p2 = por %p393_p1, %p392_p0 }
  0x41   :  { %p395_p3 = pnand %p394_p2, %p388_p13 }
  0x43   :  { %398 = shalt.err (!%p395_p3)
}
  0x44   :  { %58 = dma.hbm_to_vmem [thread:$0]  %s557_s3, 256, %s499_s17, [#allocation10], %s431_s27, %s431_s27, %s432_s28  }
  0x45   :  { %421 = dma.done.wait [#allocation4], 256  }
  0x46   :  { %422 = vsyncadd [#allocation4], 4294967040 }
  0x47   :  { %423 = dma.done.wait [#allocation7], 2064  }
  0x48   :  { %424 = vsyncadd [#allocation7], 4294965232 }
  0x49   :  { %425 = dma.done.wait [#allocation10], 256  }
  0x4a   :  { %426 = vsyncadd [#allocation10], 4294967040  ;;  %vm75_vm0 = vcmask 261120   ;;  %v435_v0 = vmov 0.0   ;;  %v82_v1 = vld [vmem:[#allocation6] sm:$0xff]  ;;  %v83_v2 = vld [vmem:[#allocation6 + $0x8] sm:$0xff] }
  0x4b   :  { %77 = vst.msk [vmem:[#allocation2 + $0x8] sm:$0xff] %vm75_vm0, %v435_v0  ;;  %76 = vst.msk [vmem:[#allocation2] sm:$0xff] %vm75_vm0, %v435_v0  ;;  %v84_v3 = vld [vmem:[#allocation6 + $0x10] sm:$0xff]  ;;  %v271_v4 = vpack.c.bf16 %v83_v2, %v82_v1  ;;  %v85_v5 = vld [vmem:[#allocation6 + $0x18] sm:$0xff]  ;;  %s436_s3 = smov [#allocation11]  }
  0x4c   :  { %v275_v6 = vpack.c.bf16 %v85_v5, %v84_v3  ;;  %v86_v7 = vld [vmem:[#allocation6 + $0x20] sm:$0xff]  ;;  %v87_v8 = vld [vmem:[#allocation6 + $0x28] sm:$0xff]  ;;  %v80_v10 = vld [vmem:[#allocation3] sm:$0xff]  ;;  %s203_s1 = sshll.u32 %s436_s3, 4  ;;  %s204_s1 = int_to_ptr.vmem [resolvable:$true] %s203_s1 }
  0x4d   :  { %272 = vmatprep.subr.bf16.mxu0 %v271_v4  ;;  %v279_v9 = vpack.c.bf16 %v87_v8, %v86_v7  ;;  %v88_v11 = vld [vmem:[#allocation6 + $0x30] sm:$0xff]  ;;  %v89_v12 = vld [vmem:[#allocation6 + $0x38] sm:$0xff]  ;;  %268 = vmatprep.mubr.f32.mxu0 %v80_v10  ;;  %v90_v14 = vld [vmem:[#allocation6 + $0x40] sm:$0xff]  ;;  %s399_s13 = scalar_lea.vmem %s204_s1, 256  ;;  %p404_p5 = scmp.lt.s32.totalorder %s204_s1, %s204_s1 }
  0x4e   :  { %274 = vmatpush3.bf16.msra.mxu0 %v271_v4  ;;  %v283_v13 = vpack.c.bf16 %v89_v12, %v88_v11  ;;  %v91_v15 = vld [vmem:[#allocation6 + $0x48] sm:$0xff]  ;;  %v92_v17 = vld [vmem:[#allocation6 + $0x50] sm:$0xff]  ;;  %v93_v18 = vld [vmem:[#allocation6 + $0x58] sm:$0xff]  ;;  %p400_p4 = scmp.ne.s32.totalorder %s204_s1, %s399_s13  ;;  %p405_p6 = scmp.lt.s32.totalorder %s399_s13, %s399_s13 }
  0x4f   :  { %276 = vmatprep.subr.bf16.mxu0 %v275_v6  ;;  %v287_v16 = vpack.c.bf16 %v91_v15, %v90_v14  ;;  %v291_v19 = vpack.c.bf16 %v93_v18, %v92_v17  ;;  %v94_v20 = vld [vmem:[#allocation6 + $0x60] sm:$0xff]  ;;  %v95_v21 = vld [vmem:[#allocation6 + $0x68] sm:$0xff]  ;;  %v96_v23 = vld [vmem:[#allocation6 + $0x70] sm:$0xff] }
  0x50   :  { %v295_v22 = vpack.c.bf16 %v95_v21, %v94_v20  ;;  %v97_v24 = vld [vmem:[#allocation6 + $0x78] sm:$0xff]  ;;  %v217_v33 = vld [vmem:[#allocation8] ss:$0 sm:$0xff]  ;;  %v193_v35 = vld [vmem:[#allocation9 + $0x8] sm:$0xff]  ;;  %p406_p7 = por %p405_p6, %p404_p5 }
  0x51   :  { %v299_v25 = vpack.c.bf16 %v97_v24, %v96_v23  ;;  %v81_v26 = vld [vmem:[#allocation3 + $0x8] sm:$0xff]  ;;  %v192_v38 = vld [vmem:[#allocation9] sm:$0xff] }
  0x52   :  { %278 = vmatpush3.bf16.msra.mxu0 %v275_v6  ;;  %v79_v27 = vld [vmem:[#allocation2 + $0x8] sm:$0xff]  ;;  %v78_v28 = vld [vmem:[#allocation2] sm:$0xff]  ;;  %p407_p8 = pnand %p406_p7, %p400_p4 }
  0x53   :  { %280 = vmatprep.subr.bf16.mxu0 %v279_v9 }
  0x56   :  { %282 = vmatpush3.bf16.msra.mxu0 %v279_v9 }
  0x57   :  { %284 = vmatprep.subr.bf16.mxu0 %v283_v13 }
  0x5a   :  { %286 = vmatpush3.bf16.msra.mxu0 %v283_v13 }
  0x5b   :  { %288 = vmatprep.subr.bf16.mxu0 %v287_v16 }
  0x5e   :  { %290 = vmatpush3.bf16.msra.mxu0 %v287_v16 }
  0x5f   :  { %292 = vmatprep.subr.bf16.mxu0 %v291_v19 }
  0x62   :  { %294 = vmatpush3.bf16.msra.mxu0 %v291_v19 }
  0x63   :  { %296 = vmatprep.subr.bf16.mxu0 %v295_v22 }
  0x66   :  { %298 = vmatpush3.bf16.msra.mxu0 %v295_v22 }
  0x67   :  { %300 = vmatprep.subr.bf16.mxu0 %v299_v25 }
  0x6a   :  { %302 = vmatpush3.bf16.msra.mxu0 %v299_v25 }
  0x6d   :  { %269 = vmatmul.mubr.f32.vlgmr.msra.gmra.mrb[0].mxu0 %v81_v26 }
 0x140   :  { %v270_v29 = vpop.f32.mrb[0].mxu0 }
 0x141   :  { %v174_v30 = vadd.f32 %v270_v29, %v79_v27  ;;  %v164_v31 = vpop.f32.mrb[1].mxu0 }
 0x142   :  { %v173_v32 = vadd.f32 %v164_v31, %v78_v28 }
 0x143   :  { %177 = vst.msk [vmem:[#allocation2 + $0x8] sm:$0xff] %vm75_vm0, %v174_v30 }
 0x144   :  { %176 = vst.msk [vmem:[#allocation2] sm:$0xff] %vm75_vm0, %v173_v32 }
 0x14a   :  { %v182_v34 = vld [vmem:[#allocation2 + $0x8] sm:$0xff] }
 0x14b   :  { %v181_v36 = vld [vmem:[#allocation2] sm:$0xff]  ;;  %v191_v37 = vadd.f32 %v217_v33, %v182_v34 }
 0x14c   :  { %v190_v39 = vadd.f32 %v217_v33, %v181_v36 }
 0x14d   :  { %v195_v40 = vadd.f32 %v193_v35, %v191_v37 }
 0x14e   :  { %v194_v41 = vadd.f32 %v192_v38, %v190_v39 }
 0x14f   :  { %197 = vst.msk [vmem:[#allocation11 + $0x8] sm:$0xff] %vm75_vm0, %v195_v40 }
 0x150   :  { %196 = vst.msk [vmem:[#allocation11] sm:$0xff] %vm75_vm0, %v194_v41 }
 0x151   :  { %410 = shalt.err (!%p407_p8)
}
 0x152   :  { %s411_s16 = scalar_lea.hbm %s558_s4, 256 }
 0x153   :  { %p412_p9 = scmp.ne.s32.totalorder %s558_s4, %s411_s16  ;;  %p415_p10 = scmp.lt.u32.totalorder %s411_s16, %s558_s4 }
 0x155   :  { %p417_p11 = pnand %p415_p10, %p412_p9 }
 0x157   :  { %420 = shalt.err (!%p417_p11)
}
 0x158   :  { %209 = dma.vmem_to_hbm [thread:$0]  %s204_s1, 256, %s558_s4, [#allocation5], %s431_s27, %s431_s27, %s432_s28  }
 0x159   :  { %427 = dma.done.wait [#allocation5], 256  }
 0x15a   :  { %428 = vsyncadd [#allocation5], 4294967040 }
 0x15b   :  { %213 = vsyncpa [#allocation4], 1 }
 0x15c   :  { %214 = vsyncpa [#allocation7], 1 }
 0x15d   :  { %215 = vsyncpa [#allocation10], 1 }
 0x15e   :  { %216 = vsyncpa [#allocation5], 1 }

// kernel: gpt_forward.31
= control target key start
LH: loop header
LB: loop body
LE: loop exit
PB: predicated region body
PF: predicated region fallthrough
CT: control target
= control target key end

     0   :  { %7 = vsyncpa [#allocation4], 0  ;;  %s334_s0 = inlined_call_operand.hbm [shape: f32[16,32], index: 0, kind: input, shape index: {}]   ;;  %s335_s1 = inlined_call_operand.hbm [shape: f32[32,128], index: 1, kind: input, shape index: {}]   ;;  %s336_s2 = inlined_call_operand.hbm [shape: f32[16,128], index: 2, kind: output, shape index: {}]  }
   0x1   :  { %8 = vsyncpa [#allocation7], 0 }
   0x2   :  { %9 = vsyncpa [#allocation5], 0  ;;  %s269_s9 = smov [#allocation3]   ;;  %s197_s13 = scalar_lea.hbm %s334_s0, 256 }
   0x3   :  { %s15_s10 = sshll.u32 %s269_s9, 4  ;;  %p198_p0 = scmp.ne.s32.totalorder %s334_s0, %s197_s13  ;;  %s16_s10 = int_to_ptr.vmem [resolvable:$true] %s15_s10 }
   0x4   :  { %p201_p1 = scmp.lt.u32.totalorder %s197_s13, %s334_s0 }
   0x6   :  { %p203_p2 = pnand %p201_p1, %p198_p0 }
   0x8   :  { %206 = shalt.err (!%p203_p2)
}
   0x9   :  { %s207_s18 = scalar_lea.vmem %s16_s10, 256  ;;  %p212_p4 = scmp.lt.s32.totalorder %s16_s10, %s16_s10 }
   0xa   :  { %p208_p3 = scmp.ne.s32.totalorder %s16_s10, %s207_s18  ;;  %p213_p5 = scmp.lt.s32.totalorder %s207_s18, %s207_s18 }
   0xc   :  { %p214_p6 = por %p213_p5, %p212_p4 }
   0xe   :  { %p215_p7 = pnand %p214_p6, %p208_p3 }
  0x10   :  { %218 = shalt.err (!%p215_p7)
}
  0x11   :  { %s270_s19 = smov 128   ;;  %s271_s20 = smov 8  }
  0x12   :  { %21 = dma.hbm_to_vmem [thread:$0]  %s334_s0, 256, %s16_s10, [#allocation4], %s270_s19, %s270_s19, %s271_s20  }
  0x13   :  { %s272_s23 = smov [#allocation6]   ;;  %s219_s27 = scalar_lea.hbm %s335_s1, 512 }
  0x14   :  { %s27_s24 = sshll.u32 %s272_s23, 4  ;;  %p220_p8 = scmp.ne.s32.totalorder %s335_s1, %s219_s27  ;;  %s28_s24 = int_to_ptr.vmem [resolvable:$true] %s27_s24 }
  0x15   :  { %p223_p9 = scmp.lt.u32.totalorder %s219_s27, %s335_s1 }
  0x17   :  { %p225_p10 = pnand %p223_p9, %p220_p8 }
  0x19   :  { %228 = shalt.err (!%p225_p10)
}
  0x1a   :  { %s229_s4 = scalar_lea.vmem %s28_s24, 512  ;;  %p234_p12 = scmp.lt.s32.totalorder %s28_s24, %s28_s24 }
  0x1b   :  { %p230_p11 = scmp.ne.s32.totalorder %s28_s24, %s229_s4  ;;  %p235_p13 = scmp.lt.s32.totalorder %s229_s4, %s229_s4 }
  0x1d   :  { %p236_p0 = por %p235_p13, %p234_p12 }
  0x1f   :  { %p237_p1 = pnand %p236_p0, %p230_p11 }
  0x21   :  { %240 = shalt.err (!%p237_p1)
}
  0x22   :  { %33 = dma.hbm_to_vmem [thread:$0]  %s335_s1, 512, %s28_s24, [#allocation7], %s270_s19, %s270_s19, %s271_s20  }
  0x23   :  { %263 = dma.done.wait [#allocation4], 256  }
  0x24   :  { %264 = vsyncadd [#allocation4], 4294967040 }
  0x25   :  { %265 = dma.done.wait [#allocation7], 512  }
  0x26   :  { %266 = vsyncadd [#allocation7], 4294966784  ;;  %vm54_vm0 = vcmask 261120   ;;  %v50_v0 = vld [vmem:[#allocation6] sm:$0xff]  ;;  %v51_v1 = vld [vmem:[#allocation6 + $0x8] sm:$0xff]  ;;  %s273_s1 = smov [#allocation8]  }
  0x27   :  { %v52_v2 = vld [vmem:[#allocation6 + $0x10] sm:$0xff]  ;;  %v184_v3 = vpack.c.bf16 %v51_v1, %v50_v0  ;;  %v53_v4 = vld [vmem:[#allocation6 + $0x18] sm:$0xff]  ;;  %s152_s6 = sshll.u32 %s273_s1, 4  ;;  %s153_s6 = int_to_ptr.vmem [resolvable:$true] %s152_s6 }
  0x28   :  { %v48_v5 = vld [vmem:[#allocation3] sm:$0xff]  ;;  %v188_v6 = vpack.c.bf16 %v53_v4, %v52_v2  ;;  %v49_v7 = vld [vmem:[#allocation3 + $0x8] sm:$0xff]  ;;  %s241_s7 = scalar_lea.vmem %s153_s6, 256  ;;  %p246_p3 = scmp.lt.s32.totalorder %s153_s6, %s153_s6 }
  0x29   :  { %181 = vmatprep.mubr.msk.f32.mxu0 %vm54_vm0, %v48_v5  ;;  %185 = vmatprep.subr.bf16.mxu0 %v184_v3  ;;  %p242_p2 = scmp.ne.s32.totalorder %s153_s6, %s241_s7  ;;  %p247_p4 = scmp.lt.s32.totalorder %s241_s7, %s241_s7 }
  0x2a   :  { %187 = vmatpush3.bf16.msra.mxu0 %v184_v3 }
  0x2b   :  { %189 = vmatprep.subr.bf16.mxu0 %v188_v6  ;;  %p248_p5 = por %p247_p4, %p246_p3 }
  0x2d   :  { %p249_p6 = pnand %p248_p5, %p242_p2 }
  0x2e   :  { %191 = vmatpush3.bf16.msra.mxu0 %v188_v6 }
  0x31   :  { %182 = vmatmul.mubr.msk.f32.vlgmr.msra.gmra.mrb[0].mxu0 %vm54_vm0, %v49_v7 }
 0x104   :  { %v183_v8 = vpop.f32.mrb[0].mxu0 }
 0x105   :  { %146 = vst [vmem:[#allocation8 + $0x8] sm:$0xff] %v183_v8  ;;  %v127_v9 = vpop.f32.mrb[1].mxu0 }
 0x106   :  { %145 = vst [vmem:[#allocation8] sm:$0xff] %v127_v9 }
 0x107   :  { %252 = shalt.err (!%p249_p6)
}
 0x108   :  { %s253_s10 = scalar_lea.hbm %s336_s2, 256 }
 0x109   :  { %p254_p7 = scmp.ne.s32.totalorder %s336_s2, %s253_s10  ;;  %p257_p8 = scmp.lt.u32.totalorder %s253_s10, %s336_s2 }
 0x10b   :  { %p259_p9 = pnand %p257_p8, %p254_p7 }
 0x10d   :  { %262 = shalt.err (!%p259_p9)
}
 0x10e   :  { %158 = dma.vmem_to_hbm [thread:$0]  %s153_s6, 256, %s336_s2, [#allocation5], %s270_s19, %s270_s19, %s271_s20  }
 0x10f   :  { %267 = dma.done.wait [#allocation5], 256  }
 0x110   :  { %268 = vsyncadd [#allocation5], 4294967040 }
 0x111   :  { %162 = vsyncpa [#allocation4], 1 }
 0x112   :  { %163 = vsyncpa [#allocation7], 1 }
 0x113   :  { %164 = vsyncpa [#allocation5], 1 }

</bundles_post_ra>
